<compile_context>
chip_gen: v7x
topology: tpu7x:2x2x1
jax: 0.10.0
libtpu: 0.0.40
codegen_flags: <defaults>
</compile_context>

<pallas_src>
import functools
import math

import jax
import jax.numpy as jnp
from jax.experimental import pallas as pl
from jax.experimental.pallas import tpu as pltpu


def _round_up(x: int, m: int) -> int:
    return (x + m - 1) // m * m


# ---------------------------------------------------------------------------
# Kernels
# ---------------------------------------------------------------------------

def _make_matmul_kernel(relu: bool, has_residual: bool, has_down: bool):
    """out = [relu]( A@W + b  [+ Xd@Wd + bd]  [+ residual] ), f32 accumulation."""

    def kernel(*refs):
        it = iter(refs)
        a_ref = next(it)
        w_ref = next(it)
        b_ref = next(it)
        if has_down:
            xd_ref = next(it)
            wd_ref = next(it)
            bd_ref = next(it)
        if has_residual:
            r_ref = next(it)
        o_ref = next(it)

        a = a_ref[...]
        if a.dtype != jnp.bfloat16:
            a = a.astype(jnp.bfloat16)
        acc = jnp.dot(a, w_ref[...], preferred_element_type=jnp.float32)
        acc = acc + b_ref[...]

        if has_down:
            xd = xd_ref[...]
            if xd.dtype != jnp.bfloat16:
                xd = xd.astype(jnp.bfloat16)
            acc = acc + jnp.dot(xd, wd_ref[...], preferred_element_type=jnp.float32)
            acc = acc + bd_ref[...]

        if has_residual:
            acc = acc + r_ref[...].astype(jnp.float32)

        if relu:
            acc = jnp.maximum(acc, 0.0)
        o_ref[...] = acc.astype(o_ref.dtype)

    return kernel


def _make_conv3x3_kernel(row_offsets, tm: int, win_rows: int, relu: bool):
    """3x3 conv as 9 row-shifted matmuls over the flattened padded activation."""

    def kernel(x_ref, w_ref, b_ref, o_ref):
        i = pl.program_id(0)
        base = pl.multiple_of(i * tm, tm)
        win = x_ref[pl.ds(base, win_rows), :]          # (win_rows, C), aligned start
        if win.dtype != jnp.bfloat16:
            win = win.astype(jnp.bfloat16)
        acc = None
        for t, off in enumerate(row_offsets):          # 9 static taps
            a = win[off:off + tm, :]                   # static slice of the window
            d = jnp.dot(a, w_ref[t], preferred_element_type=jnp.float32)
            acc = d if acc is None else acc + d
        acc = acc + b_ref[...]
        if relu:
            acc = jnp.maximum(acc, 0.0)
        o_ref[...] = acc.astype(o_ref.dtype)

    return kernel


# ---------------------------------------------------------------------------
# Pallas wrappers
# ---------------------------------------------------------------------------

def fused_pointwise(a, w, b, *, relu=True, residual=None, down=None,
                    out_dtype=jnp.bfloat16):
    """1x1-conv style fused matmul.  a:(M,K), w:(K,N) bf16, b:(N,) f32."""
    M, K = a.shape
    Kw, N = w.shape
    assert K == Kw

    tm = min(128, _round_up(M, 8))
    Mp = _round_up(M, tm)
    tn = 128 if (N % 128 == 0) else N

    if Mp != M:
        a = jnp.pad(a, ((0, Mp - M), (0, 0)))

    inputs = [a, w, b.reshape(1, N)]
    in_specs = [
        pl.BlockSpec((tm, K), lambda i, j: (i, 0)),
        pl.BlockSpec((K, tn), lambda i, j: (0, j)),
        pl.BlockSpec((1, tn), lambda i, j: (0, j)),
    ]

    has_down = down is not None
    has_res = residual is not None
    if has_down:
        xd, wd, bd = down
        Kd = xd.shape[1]
        if Mp != M:
            xd = jnp.pad(xd, ((0, Mp - M), (0, 0)))
        inputs += [xd, wd, bd.reshape(1, N)]
        in_specs += [
            pl.BlockSpec((tm, Kd), lambda i, j: (i, 0)),
            pl.BlockSpec((Kd, tn), lambda i, j: (0, j)),
            pl.BlockSpec((1, tn), lambda i, j: (0, j)),
        ]
    if has_res:
        r = residual
        if Mp != M:
            r = jnp.pad(r, ((0, Mp - M), (0, 0)))
        inputs.append(r)
        in_specs.append(pl.BlockSpec((tm, tn), lambda i, j: (i, j)))

    kernel = _make_matmul_kernel(relu, has_res, has_down)
    out = pl.pallas_call(
        kernel,
        out_shape=jax.ShapeDtypeStruct((Mp, N), out_dtype),
        grid=(Mp // tm, N // tn),
        in_specs=in_specs,
        out_specs=pl.BlockSpec((tm, tn), lambda i, j: (i, j)),
        compiler_params=pltpu.CompilerParams(
            dimension_semantics=("parallel", "parallel")),
    )(*inputs)
    return out[:M] if Mp != M else out


def conv3x3_bn_relu(x, w9, b, stride):
    """x:(B,H,W,C) bf16, w9:(9,C,Cout) bf16 (BN folded), b:(Cout,) f32, pad=1."""
    B, H, W, C = x.shape
    Cout = w9.shape[2]
    Ho = (H + 2 - 3) // stride + 1
    Wo = (W + 2 - 3) // stride + 1

    xp = jnp.pad(x, ((0, 0), (1, 1), (1, 1), (0, 0)))        # (B, H+2, W+2, C)
    Hp, Wp = H + 2, W + 2
    Mfull = B * Hp * Wp

    tm = min(128, _round_up(Mfull, 8))
    Mp = _round_up(Mfull, tm)
    max_off = 2 * Wp + 2
    win_rows = tm + _round_up(max_off, 8)
    Qp = Mp + _round_up(max_off, 8)

    x2d = jnp.pad(xp.reshape(Mfull, C), ((0, Qp - Mfull), (0, 0)))
    row_offsets = tuple(di * Wp + dj for di in range(3) for dj in range(3))

    kernel = _make_conv3x3_kernel(row_offsets, tm, win_rows, relu=True)
    out2d = pl.pallas_call(
        kernel,
        out_shape=jax.ShapeDtypeStruct((Mp, Cout), jnp.bfloat16),
        grid=(Mp // tm,),
        in_specs=[
            pl.BlockSpec((Qp, C), lambda i: (0, 0)),         # resident, not re-DMA'd
            pl.BlockSpec((9, C, Cout), lambda i: (0, 0, 0)),
            pl.BlockSpec((1, Cout), lambda i: (0, 0)),
        ],
        out_specs=pl.BlockSpec((tm, Cout), lambda i: (i, 0)),
        compiler_params=pltpu.CompilerParams(
            dimension_semantics=("parallel",)),
    )(x2d, w9, b.reshape(1, Cout))

    yfull = out2d[:Mfull].reshape(B, Hp, Wp, Cout)
    y = yfull[:, 0:stride * (Ho - 1) + 1:stride,
              0:stride * (Wo - 1) + 1:stride, :]
    return y                                                  # (B, Ho, Wo, Cout) bf16


# ---------------------------------------------------------------------------
# Parameter construction (weights pre-packed, BN folded, bf16 -- hoisted to init)
# ---------------------------------------------------------------------------

EXPANSION = 4


def _bn_fold(c, eps=1e-5):
    gamma = jnp.ones((c,), jnp.float32)
    beta = jnp.zeros((c,), jnp.float32)
    mean = jnp.zeros((c,), jnp.float32)
    var = jnp.ones((c,), jnp.float32)
    scale = gamma / jnp.sqrt(var + eps)
    bias = beta - mean * scale
    return scale, bias


def _conv_weight(key, cin, cout, k):
    fan_out = cout * k * k
    std = math.sqrt(2.0 / fan_out)
    shape = (k * k, cin, cout) if k > 1 else (cin, cout)
    return std * jax.random.normal(key, shape, dtype=jnp.float32)


def init_bottleneck_params(key, in_channels, planes, stride):
    out_ch = planes * EXPANSION
    keys = jax.random.split(key, 4)

    def pack(w, scale):
        return (w * scale).astype(jnp.bfloat16)   # fold BN scale into weight cols

    p = {}
    s1, b1 = _bn_fold(planes)
    p["w1"] = pack(_conv_weight(keys[0], in_channels, planes, 1), s1)
    p["b1"] = b1
    s2, b2 = _bn_fold(planes)
    p["w2"] = pack(_conv_weight(keys[1], planes, planes, 3), s2)
    p["b2"] = b2
    s3, b3 = _bn_fold(out_ch)
    p["w3"] = pack(_conv_weight(keys[2], planes, out_ch, 1), s3)
    p["b3"] = b3
    if stride != 1 or in_channels != out_ch:
        sd, bd = _bn_fold(out_ch)
        p["wd"] = pack(_conv_weight(keys[3], in_channels, out_ch, 1), sd)
        p["bd"] = bd
    return p


# ---------------------------------------------------------------------------
# Bottleneck forward
# ---------------------------------------------------------------------------

@functools.partial(jax.jit, static_argnames=("stride",))
def bottleneck_forward(params, x_nchw, *, stride=1):
    x = jnp.transpose(x_nchw, (0, 2, 3, 1)).astype(jnp.float32)   # NHWC
    B, H, W, Cin = x.shape
    planes = params["w1"].shape[1]
    out_ch = params["w3"].shape[1]
    x_bf = x.astype(jnp.bfloat16)

    # conv1 (1x1) + bn1 + relu
    h1 = fused_pointwise(x_bf.reshape(B * H * W, Cin), params["w1"], params["b1"],
                         relu=True, out_dtype=jnp.bfloat16)
    h1 = h1.reshape(B, H, W, planes)

    # conv2 (3x3, stride, pad=1) + bn2 + relu
    h2 = conv3x3_bn_relu(h1, params["w2"], params["b2"], stride)
    Ho, Wo = h2.shape[1], h2.shape[2]
    a3 = h2.reshape(B * Ho * Wo, planes)

    # conv3 (1x1) + bn3 + residual (optionally downsampled) + relu -- one kernel
    if "wd" in params:
        xs = x_bf[:, 0:stride * (Ho - 1) + 1:stride,
                  0:stride * (Wo - 1) + 1:stride, :]
        xd = xs.reshape(B * Ho * Wo, Cin)
        out2d = fused_pointwise(a3, params["w3"], params["b3"], relu=True,
                                out_dtype=jnp.float32,
                                down=(xd, params["wd"], params["bd"]))
    else:
        ident = x.reshape(B * H * W, Cin)                       # f32 residual
        out2d = fused_pointwise(a3, params["w3"], params["b3"], relu=True,
                                out_dtype=jnp.float32, residual=ident)

    out = out2d.reshape(B, Ho, Wo, out_ch)
    return jnp.transpose(out, (0, 3, 1, 2))                     # back to NCHW


# ---------------------------------------------------------------------------
# Main
# ---------------------------------------------------------------------------

if __name__ == "__main__":
    root = jax.random.PRNGKey(0)
    pkey, xkey = jax.random.split(root)

    # ResNet-50 layer2[0]-style block: in=256, planes=128, stride=2, downsample.
    B, Cin, H, W = 2, 256, 16, 16
    planes, stride = 128, 2

    params = init_bottleneck_params(pkey, Cin, planes, stride)
    x = jax.random.normal(xkey, (B, Cin, H, W), dtype=jnp.float32)   # NCHW

    out = bottleneck_forward(params, x, stride=stride)
    out = jax.block_until_ready(out)

    Ho = (H + 2 - 3) // stride + 1
    assert out.shape == (B, planes * EXPANSION, Ho, Ho), out.shape
    assert bool(jnp.all(jnp.isfinite(out)))
    assert bool(jnp.all(out >= 0.0))   # final ReLU
    print("KERNEL_OK")
</pallas_src>

<mosaic_0001>
module attributes {stable_mosaic.version = 11 : i64} {
  func.func @kernel(%arg0: i32, %arg1: i32, %arg2: memref<128x256xbf16, #tpu.memory_space<vmem>>, %arg3: memref<256x128xbf16, #tpu.memory_space<vmem>>, %arg4: memref<1x128xf32, #tpu.memory_space<vmem>>, %arg5: memref<128x128xbf16, #tpu.memory_space<vmem>>) attributes {dimension_semantics = [#tpu.dimension_semantics<parallel>, #tpu.dimension_semantics<parallel>], iteration_bounds = array<i64: 4, 1>, scalar_prefetch = 0 : i64, scratch_operands = 0 : i64, tpu.core_type = #tpu.core_type<tc>, window_params = [{transform_indices = @transform_0, window_bounds = array<i64: 128, 256>}, {transform_indices = @transform_1, window_bounds = array<i64: 256, 128>}, {transform_indices = @transform_2, window_bounds = array<i64: 1, 128>}, {transform_indices = @transform_3, window_bounds = array<i64: 128, 128>}]} {
    %c0 = arith.constant 0 : index
    %c0_0 = arith.constant 0 : index
    %0 = vector.load %arg2[%c0, %c0_0] : memref<128x256xbf16, #tpu.memory_space<vmem>>, vector<128x256xbf16>
    %c0_1 = arith.constant 0 : index
    %c0_2 = arith.constant 0 : index
    %1 = vector.load %arg3[%c0_1, %c0_2] : memref<256x128xbf16, #tpu.memory_space<vmem>>, vector<256x128xbf16>
    %cst = arith.constant dense<0.000000e+00> : vector<128x128xf32>
    %2 = tpu.matmul %0, %1, %cst {dimension_numbers = #tpu.dot_dimension_numbers<[1], [0], [0], [1], [0, 0, 1, 1], [], []>} : vector<128x256xbf16>, vector<256x128xbf16>, vector<128x128xf32> -> vector<128x128xf32>
    %c0_3 = arith.constant 0 : index
    %c0_4 = arith.constant 0 : index
    %3 = vector.load %arg4[%c0_3, %c0_4] : memref<1x128xf32, #tpu.memory_space<vmem>>, vector<1x128xf32>
    %4 = vector.broadcast %3 : vector<1x128xf32> to vector<128x128xf32>
    %5 = arith.addf %2, %4 : vector<128x128xf32>
    %cst_5 = arith.constant 0.000000e+00 : f32
    %6 = vector.broadcast %cst_5 : f32 to vector<128x128xf32>
    %7 = arith.maximumf %5, %6 : vector<128x128xf32>
    %8 = arith.truncf %7 : vector<128x128xf32> to vector<128x128xbf16>
    %c0_6 = arith.constant 0 : index
    %c0_7 = arith.constant 0 : index
    %9 = vector.load %arg5[%c0_6, %c0_7] : memref<128x128xbf16, #tpu.memory_space<vmem>>, vector<128x128xbf16>
    tpu.vector_store %arg5[%c0_6, %c0_7], %8 {strides = array<i32>} : memref<128x128xbf16, #tpu.memory_space<vmem>>, vector<128x128xbf16>,
    return
  }
  func.func @transform_0(%arg0: i32, %arg1: i32) -> (i32, i32) {
    %c0_i32 = arith.constant 0 : i32
    %c0_i32_0 = arith.constant 0 : i32
    return %arg0, %c0_i32 : i32, i32
  }
  func.func @transform_1(%arg0: i32, %arg1: i32) -> (i32, i32) {
    %c0_i32 = arith.constant 0 : i32
    %c0_i32_0 = arith.constant 0 : i32
    return %c0_i32, %arg1 : i32, i32
  }
  func.func @transform_2(%arg0: i32, %arg1: i32) -> (i32, i32) {
    %c0_i32 = arith.constant 0 : i32
    %c0_i32_0 = arith.constant 0 : i32
    return %c0_i32, %arg1 : i32, i32
  }
  func.func @transform_3(%arg0: i32, %arg1: i32) -> (i32, i32) {
    %c0_i32 = arith.constant 0 : i32
    return %arg0, %arg1 : i32, i32
  }
}

module attributes {stable_mosaic.version = 11 : i64} {
  func.func @kernel(%arg0: i32, %arg1: memref<808x128xbf16, #tpu.memory_space<vmem>>, %arg2: memref<9x128x128xbf16, #tpu.memory_space<vmem>>, %arg3: memref<1x128xf32, #tpu.memory_space<vmem>>, %arg4: memref<128x128xbf16, #tpu.memory_space<vmem>>) attributes {dimension_semantics = [#tpu.dimension_semantics<parallel>], iteration_bounds = array<i64: 6>, scalar_prefetch = 0 : i64, scratch_operands = 0 : i64, tpu.core_type = #tpu.core_type<tc>, window_params = [{pipeline_mode = #tpu.pipeline_mode<synchronous>, transform_indices = @transform_0, window_bounds = array<i64: 808, 128>}, {pipeline_mode = #tpu.pipeline_mode<synchronous>, transform_indices = @transform_1, window_bounds = array<i64: 9, 128, 128>}, {pipeline_mode = #tpu.pipeline_mode<synchronous>, transform_indices = @transform_2, window_bounds = array<i64: 1, 128>}, {transform_indices = @transform_3, window_bounds = array<i64: 128, 128>}]} {
    %c128_i32 = arith.constant 128 : i32
    %0 = arith.muli %arg0, %c128_i32 : i32
    %1 = tpu.assume_multiple %0, 128 : i32
    %2 = arith.index_cast %1 : i32 to index
    %c0 = arith.constant 0 : index
    %3 = vector.load %arg1[%2, %c0] : memref<808x128xbf16, #tpu.memory_space<vmem>>, vector<168x128xbf16>
    %4 = vector.extract_strided_slice %3 {offsets = [0, 0], sizes = [128, 128], strides = [1, 1]} : vector<168x128xbf16> to vector<128x128xbf16>
    %c0_0 = arith.constant 0 : index
    %c0_1 = arith.constant 0 : index
    %c0_2 = arith.constant 0 : index
    %5 = vector.load %arg2[%c0_0, %c0_1, %c0_2] : memref<9x128x128xbf16, #tpu.memory_space<vmem>>, vector<1x128x128xbf16>
    %6 = vector.shape_cast %5 : vector<1x128x128xbf16> to vector<128x128xbf16>
    %cst = arith.constant dense<0.000000e+00> : vector<128x128xf32>
    %7 = tpu.matmul %4, %6, %cst {dimension_numbers = #tpu.dot_dimension_numbers<[1], [0], [0], [1], [0, 0, 1, 1], [], []>} : vector<128x128xbf16>, vector<128x128xbf16>, vector<128x128xf32> -> vector<128x128xf32>
    %8 = vector.extract_strided_slice %3 {offsets = [1, 0], sizes = [128, 128], strides = [1, 1]} : vector<168x128xbf16> to vector<128x128xbf16>
    %c1 = arith.constant 1 : index
    %c0_3 = arith.constant 0 : index
    %c0_4 = arith.constant 0 : index
    %9 = vector.load %arg2[%c1, %c0_3, %c0_4] : memref<9x128x128xbf16, #tpu.memory_space<vmem>>, vector<1x128x128xbf16>
    %10 = vector.shape_cast %9 : vector<1x128x128xbf16> to vector<128x128xbf16>
    %cst_5 = arith.constant dense<0.000000e+00> : vector<128x128xf32>
    %11 = tpu.matmul %8, %10, %cst_5 {dimension_numbers = #tpu.dot_dimension_numbers<[1], [0], [0], [1], [0, 0, 1, 1], [], []>} : vector<128x128xbf16>, vector<128x128xbf16>, vector<128x128xf32> -> vector<128x128xf32>
    %12 = arith.addf %7, %11 : vector<128x128xf32>
    %13 = vector.extract_strided_slice %3 {offsets = [2, 0], sizes = [128, 128], strides = [1, 1]} : vector<168x128xbf16> to vector<128x128xbf16>
    %c2 = arith.constant 2 : index
    %c0_6 = arith.constant 0 : index
    %c0_7 = arith.constant 0 : index
    %14 = vector.load %arg2[%c2, %c0_6, %c0_7] : memref<9x128x128xbf16, #tpu.memory_space<vmem>>, vector<1x128x128xbf16>
    %15 = vector.shape_cast %14 : vector<1x128x128xbf16> to vector<128x128xbf16>
    %cst_8 = arith.constant dense<0.000000e+00> : vector<128x128xf32>
    %16 = tpu.matmul %13, %15, %cst_8 {dimension_numbers = #tpu.dot_dimension_numbers<[1], [0], [0], [1], [0, 0, 1, 1], [], []>} : vector<128x128xbf16>, vector<128x128xbf16>, vector<128x128xf32> -> vector<128x128xf32>
    %17 = arith.addf %12, %16 : vector<128x128xf32>
    %18 = vector.extract_strided_slice %3 {offsets = [18, 0], sizes = [128, 128], strides = [1, 1]} : vector<168x128xbf16> to vector<128x128xbf16>
    %c3 = arith.constant 3 : index
    %c0_9 = arith.constant 0 : index
    %c0_10 = arith.constant 0 : index
    %19 = vector.load %arg2[%c3, %c0_9, %c0_10] : memref<9x128x128xbf16, #tpu.memory_space<vmem>>, vector<1x128x128xbf16>
    %20 = vector.shape_cast %19 : vector<1x128x128xbf16> to vector<128x128xbf16>
    %cst_11 = arith.constant dense<0.000000e+00> : vector<128x128xf32>
    %21 = tpu.matmul %18, %20, %cst_11 {dimension_numbers = #tpu.dot_dimension_numbers<[1], [0], [0], [1], [0, 0, 1, 1], [], []>} : vector<128x128xbf16>, vector<128x128xbf16>, vector<128x128xf32> -> vector<128x128xf32>
    %22 = arith.addf %17, %21 : vector<128x128xf32>
    %23 = vector.extract_strided_slice %3 {offsets = [19, 0], sizes = [128, 128], strides = [1, 1]} : vector<168x128xbf16> to vector<128x128xbf16>
    %c4 = arith.constant 4 : index
    %c0_12 = arith.constant 0 : index
    %c0_13 = arith.constant 0 : index
    %24 = vector.load %arg2[%c4, %c0_12, %c0_13] : memref<9x128x128xbf16, #tpu.memory_space<vmem>>, vector<1x128x128xbf16>
    %25 = vector.shape_cast %24 : vector<1x128x128xbf16> to vector<128x128xbf16>
    %cst_14 = arith.constant dense<0.000000e+00> : vector<128x128xf32>
    %26 = tpu.matmul %23, %25, %cst_14 {dimension_numbers = #tpu.dot_dimension_numbers<[1], [0], [0], [1], [0, 0, 1, 1], [], []>} : vector<128x128xbf16>, vector<128x128xbf16>, vector<128x128xf32> -> vector<128x128xf32>
    %27 = arith.addf %22, %26 : vector<128x128xf32>
    %28 = vector.extract_strided_slice %3 {offsets = [20, 0], sizes = [128, 128], strides = [1, 1]} : vector<168x128xbf16> to vector<128x128xbf16>
    %c5 = arith.constant 5 : index
    %c0_15 = arith.constant 0 : index
    %c0_16 = arith.constant 0 : index
    %29 = vector.load %arg2[%c5, %c0_15, %c0_16] : memref<9x128x128xbf16, #tpu.memory_space<vmem>>, vector<1x128x128xbf16>
    %30 = vector.shape_cast %29 : vector<1x128x128xbf16> to vector<128x128xbf16>
    %cst_17 = arith.constant dense<0.000000e+00> : vector<128x128xf32>
    %31 = tpu.matmul %28, %30, %cst_17 {dimension_numbers = #tpu.dot_dimension_numbers<[1], [0], [0], [1], [0, 0, 1, 1], [], []>} : vector<128x128xbf16>, vector<128x128xbf16>, vector<128x128xf32> -> vector<128x128xf32>
    %32 = arith.addf %27, %31 : vector<128x128xf32>
    %33 = vector.extract_strided_slice %3 {offsets = [36, 0], sizes = [128, 128], strides = [1, 1]} : vector<168x128xbf16> to vector<128x128xbf16>
    %c6 = arith.constant 6 : index
    %c0_18 = arith.constant 0 : index
    %c0_19 = arith.constant 0 : index
    %34 = vector.load %arg2[%c6, %c0_18, %c0_19] : memref<9x128x128xbf16, #tpu.memory_space<vmem>>, vector<1x128x128xbf16>
    %35 = vector.shape_cast %34 : vector<1x128x128xbf16> to vector<128x128xbf16>
    %cst_20 = arith.constant dense<0.000000e+00> : vector<128x128xf32>
    %36 = tpu.matmul %33, %35, %cst_20 {dimension_numbers = #tpu.dot_dimension_numbers<[1], [0], [0], [1], [0, 0, 1, 1], [], []>} : vector<128x128xbf16>, vector<128x128xbf16>, vector<128x128xf32> -> vector<128x128xf32>
    %37 = arith.addf %32, %36 : vector<128x128xf32>
    %38 = vector.extract_strided_slice %3 {offsets = [37, 0], sizes = [128, 128], strides = [1, 1]} : vector<168x128xbf16> to vector<128x128xbf16>
    %c7 = arith.constant 7 : index
    %c0_21 = arith.constant 0 : index
    %c0_22 = arith.constant 0 : index
    %39 = vector.load %arg2[%c7, %c0_21, %c0_22] : memref<9x128x128xbf16, #tpu.memory_space<vmem>>, vector<1x128x128xbf16>
    %40 = vector.shape_cast %39 : vector<1x128x128xbf16> to vector<128x128xbf16>
    %cst_23 = arith.constant dense<0.000000e+00> : vector<128x128xf32>
    %41 = tpu.matmul %38, %40, %cst_23 {dimension_numbers = #tpu.dot_dimension_numbers<[1], [0], [0], [1], [0, 0, 1, 1], [], []>} : vector<128x128xbf16>, vector<128x128xbf16>, vector<128x128xf32> -> vector<128x128xf32>
    %42 = arith.addf %37, %41 : vector<128x128xf32>
    %43 = vector.extract_strided_slice %3 {offsets = [38, 0], sizes = [128, 128], strides = [1, 1]} : vector<168x128xbf16> to vector<128x128xbf16>
    %c8 = arith.constant 8 : index
    %c0_24 = arith.constant 0 : index
    %c0_25 = arith.constant 0 : index
    %44 = vector.load %arg2[%c8, %c0_24, %c0_25] : memref<9x128x128xbf16, #tpu.memory_space<vmem>>, vector<1x128x128xbf16>
    %45 = vector.shape_cast %44 : vector<1x128x128xbf16> to vector<128x128xbf16>
    %cst_26 = arith.constant dense<0.000000e+00> : vector<128x128xf32>
    %46 = tpu.matmul %43, %45, %cst_26 {dimension_numbers = #tpu.dot_dimension_numbers<[1], [0], [0], [1], [0, 0, 1, 1], [], []>} : vector<128x128xbf16>, vector<128x128xbf16>, vector<128x128xf32> -> vector<128x128xf32>
    %47 = arith.addf %42, %46 : vector<128x128xf32>
    %c0_27 = arith.constant 0 : index
    %c0_28 = arith.constant 0 : index
    %48 = vector.load %arg3[%c0_27, %c0_28] : memref<1x128xf32, #tpu.memory_space<vmem>>, vector<1x128xf32>
    %49 = vector.broadcast %48 : vector<1x128xf32> to vector<128x128xf32>
    %50 = arith.addf %47, %49 : vector<128x128xf32>
    %cst_29 = arith.constant 0.000000e+00 : f32
    %51 = vector.broadcast %cst_29 : f32 to vector<128x128xf32>
    %52 = arith.maximumf %50, %51 : vector<128x128xf32>
    %53 = arith.truncf %52 : vector<128x128xf32> to vector<128x128xbf16>
    %c0_30 = arith.constant 0 : index
    %c0_31 = arith.constant 0 : index
    %54 = vector.load %arg4[%c0_30, %c0_31] : memref<128x128xbf16, #tpu.memory_space<vmem>>, vector<128x128xbf16>
    tpu.vector_store %arg4[%c0_30, %c0_31], %53 {strides = array<i32>} : memref<128x128xbf16, #tpu.memory_space<vmem>>, vector<128x128xbf16>,
    return
  }
  func.func @transform_0(%arg0: i32) -> (i32, i32) {
    %c0_i32 = arith.constant 0 : i32
    %c0_i32_0 = arith.constant 0 : i32
    %c0_i32_1 = arith.constant 0 : i32
    return %c0_i32, %c0_i32_0 : i32, i32
  }
  func.func @transform_1(%arg0: i32) -> (i32, i32, i32) {
    %c0_i32 = arith.constant 0 : i32
    %c0_i32_0 = arith.constant 0 : i32
    %c0_i32_1 = arith.constant 0 : i32
    %c0_i32_2 = arith.constant 0 : i32
    return %c0_i32, %c0_i32_0, %c0_i32_1 : i32, i32, i32
  }
  func.func @transform_2(%arg0: i32) -> (i32, i32) {
    %c0_i32 = arith.constant 0 : i32
    %c0_i32_0 = arith.constant 0 : i32
    %c0_i32_1 = arith.constant 0 : i32
    return %c0_i32, %c0_i32_0 : i32, i32
  }
  func.func @transform_3(%arg0: i32) -> (i32, i32) {
    %c0_i32 = arith.constant 0 : i32
    %c0_i32_0 = arith.constant 0 : i32
    return %arg0, %c0_i32 : i32, i32
  }
}

module attributes {stable_mosaic.version = 11 : i64} {
  func.func @kernel(%arg0: i32, %arg1: i32, %arg2: memref<128x128xbf16, #tpu.memory_space<vmem>>, %arg3: memref<128x128xbf16, #tpu.memory_space<vmem>>, %arg4: memref<1x128xf32, #tpu.memory_space<vmem>>, %arg5: memref<128x256xbf16, #tpu.memory_space<vmem>>, %arg6: memref<256x128xbf16, #tpu.memory_space<vmem>>, %arg7: memref<1x128xf32, #tpu.memory_space<vmem>>, %arg8: memref<128x128xf32, #tpu.memory_space<vmem>>) attributes {dimension_semantics = [#tpu.dimension_semantics<parallel>, #tpu.dimension_semantics<parallel>], iteration_bounds = array<i64: 1, 4>, scalar_prefetch = 0 : i64, scratch_operands = 0 : i64, tpu.core_type = #tpu.core_type<tc>, window_params = [{transform_indices = @transform_0, window_bounds = array<i64: 128, 128>}, {transform_indices = @transform_1, window_bounds = array<i64: 128, 128>}, {transform_indices = @transform_2, window_bounds = array<i64: 1, 128>}, {transform_indices = @transform_3, window_bounds = array<i64: 128, 256>}, {transform_indices = @transform_4, window_bounds = array<i64: 256, 128>}, {transform_indices = @transform_5, window_bounds = array<i64: 1, 128>}, {transform_indices = @transform_6, window_bounds = array<i64: 128, 128>}]} {
    %c0 = arith.constant 0 : index
    %c0_0 = arith.constant 0 : index
    %0 = vector.load %arg2[%c0, %c0_0] : memref<128x128xbf16, #tpu.memory_space<vmem>>, vector<128x128xbf16>
    %c0_1 = arith.constant 0 : index
    %c0_2 = arith.constant 0 : index
    %1 = vector.load %arg3[%c0_1, %c0_2] : memref<128x128xbf16, #tpu.memory_space<vmem>>, vector<128x128xbf16>
    %cst = arith.constant dense<0.000000e+00> : vector<128x128xf32>
    %2 = tpu.matmul %0, %1, %cst {dimension_numbers = #tpu.dot_dimension_numbers<[1], [0], [0], [1], [0, 0, 1, 1], [], []>} : vector<128x128xbf16>, vector<128x128xbf16>, vector<128x128xf32> -> vector<128x128xf32>
    %c0_3 = arith.constant 0 : index
    %c0_4 = arith.constant 0 : index
    %3 = vector.load %arg4[%c0_3, %c0_4] : memref<1x128xf32, #tpu.memory_space<vmem>>, vector<1x128xf32>
    %4 = vector.broadcast %3 : vector<1x128xf32> to vector<128x128xf32>
    %5 = arith.addf %2, %4 : vector<128x128xf32>
    %c0_5 = arith.constant 0 : index
    %c0_6 = arith.constant 0 : index
    %6 = vector.load %arg5[%c0_5, %c0_6] : memref<128x256xbf16, #tpu.memory_space<vmem>>, vector<128x256xbf16>
    %c0_7 = arith.constant 0 : index
    %c0_8 = arith.constant 0 : index
    %7 = vector.load %arg6[%c0_7, %c0_8] : memref<256x128xbf16, #tpu.memory_space<vmem>>, vector<256x128xbf16>
    %cst_9 = arith.constant dense<0.000000e+00> : vector<128x128xf32>
    %8 = tpu.matmul %6, %7, %cst_9 {dimension_numbers = #tpu.dot_dimension_numbers<[1], [0], [0], [1], [0, 0, 1, 1], [], []>} : vector<128x256xbf16>, vector<256x128xbf16>, vector<128x128xf32> -> vector<128x128xf32>
    %9 = arith.addf %5, %8 : vector<128x128xf32>
    %c0_10 = arith.constant 0 : index
    %c0_11 = arith.constant 0 : index
    %10 = vector.load %arg7[%c0_10, %c0_11] : memref<1x128xf32, #tpu.memory_space<vmem>>, vector<1x128xf32>
    %11 = vector.broadcast %10 : vector<1x128xf32> to vector<128x128xf32>
    %12 = arith.addf %9, %11 : vector<128x128xf32>
    %cst_12 = arith.constant 0.000000e+00 : f32
    %13 = vector.broadcast %cst_12 : f32 to vector<128x128xf32>
    %14 = arith.maximumf %12, %13 : vector<128x128xf32>
    %c0_13 = arith.constant 0 : index
    %c0_14 = arith.constant 0 : index
    %15 = vector.load %arg8[%c0_13, %c0_14] : memref<128x128xf32, #tpu.memory_space<vmem>>, vector<128x128xf32>
    tpu.vector_store %arg8[%c0_13, %c0_14], %14 {strides = array<i32>} : memref<128x128xf32, #tpu.memory_space<vmem>>, vector<128x128xf32>,
    return
  }
  func.func @transform_0(%arg0: i32, %arg1: i32) -> (i32, i32) {
    %c0_i32 = arith.constant 0 : i32
    %c0_i32_0 = arith.constant 0 : i32
    return %arg0, %c0_i32 : i32, i32
  }
  func.func @transform_1(%arg0: i32, %arg1: i32) -> (i32, i32) {
    %c0_i32 = arith.constant 0 : i32
    %c0_i32_0 = arith.constant 0 : i32
    return %c0_i32, %arg1 : i32, i32
  }
  func.func @transform_2(%arg0: i32, %arg1: i32) -> (i32, i32) {
    %c0_i32 = arith.constant 0 : i32
    %c0_i32_0 = arith.constant 0 : i32
    return %c0_i32, %arg1 : i32, i32
  }
  func.func @transform_3(%arg0: i32, %arg1: i32) -> (i32, i32) {
    %c0_i32 = arith.constant 0 : i32
    %c0_i32_0 = arith.constant 0 : i32
    return %arg0, %c0_i32 : i32, i32
  }
  func.func @transform_4(%arg0: i32, %arg1: i32) -> (i32, i32) {
    %c0_i32 = arith.constant 0 : i32
    %c0_i32_0 = arith.constant 0 : i32
    return %c0_i32, %arg1 : i32, i32
  }
  func.func @transform_5(%arg0: i32, %arg1: i32) -> (i32, i32) {
    %c0_i32 = arith.constant 0 : i32
    %c0_i32_0 = arith.constant 0 : i32
    return %c0_i32, %arg1 : i32, i32
  }
  func.func @transform_6(%arg0: i32, %arg1: i32) -> (i32, i32) {
    %c0_i32 = arith.constant 0 : i32
    return %arg0, %arg1 : i32, i32
  }
}

</mosaic_0001>

<bundles_post_ra>
// kernel: bottleneck_forward.3
= control target key start
LH: loop header
LB: loop body
LE: loop exit
PB: predicated region body
PF: predicated region fallthrough
CT: control target
= control target key end

     0   :  { %s1070_s12 = smov 0   ;;  %s1072_s13 = smov 0   ;;  %s1204_s0 = inlined_call_operand.vmem [shape: bf16[512,256], index: 0, kind: input, shape index: {}]   ;;  %s1205_s1 = inlined_call_operand.vmem [shape: bf16[256,128], index: 1, kind: input, shape index: {}]   ;;  %s1206_s2 = inlined_call_operand.vmem [shape: f32[1,128], index: 2, kind: input, shape index: {}]   ;;  %s1207_s3 = inlined_call_operand.vmem [shape: bf16[512,128], index: 3, kind: output, shape index: {}]  }
   0x1   :  { %s1074_s14 = smov 0  }
   0x2 LB: > { %s25_s15 = sadd.s32 1, %s1044_s13  ;;  %p761_p0 = scmp.ge.s32.totalorder %s1048_s14, 1  ;;  %s1048_s14 = sphi %s1074_s14, %s13_s14   ;;  %s1044_s13 = sphi %s1072_s13, %s1209_s13   ;;  %s1040_s12 = sphi %s1070_s12, %s1208_s12  }
   0x3   : > { %p27_p1 = scmp.ge.s32.totalorder %s25_s15, 4  ;;  %p170_p2 = scmp.lt.s32.totalorder %s1048_s14, 5 }
   0x5   : > { %s1211_s15 = smov (%p27_p1, %s25_s15), 0  ;;  %p171_p3 = pnand %p761_p0, %p170_p2 }
   0x6   : > { %v986_v0 = vld [vmem:[%s1205_s1 + $0x40] sm:$0xff] (!%p171_p3)   ;;  %s762_s18 = sshll.u32 (!%p171_p3), %s1040_s12, 4  ;;  %v988_v2 = vld [vmem:[%s1205_s1 + $0x48] sm:$0xff] (!%p171_p3)   ;;  %v990_v4 = vld [vmem:[%s1205_s1 + $0x50] sm:$0xff] (!%p171_p3)  }
   0x7   : > { %174 = sbr.rel (%p171_p3) target bundleno = 288 (0x120), region = 32  ;;  %v987_v1 = vld [vmem:[%s1205_s1] sm:$0xff] (!%p171_p3)   ;;  %882 = vmatprep.subr.bf16.mxu0 (!%p171_p3), %v986_v0  ;;  %946 = vmatprep.subr.bf16.mxu1 (!%p171_p3), %v986_v0  ;;  %v989_v3 = vld [vmem:[%s1205_s1 + $0x8] sm:$0xff] (!%p171_p3)   ;;  %p206_p4 = scmp.lt.s32.totalorder (!%p171_p3), %s762_s18, 63  ;;  %v991_v5 = vld [vmem:[%s1205_s1 + $0x10] sm:$0xff] (!%p171_p3)  }
   0x8   : > { %883 = vmatpush3.bf16.msra.mxu0 (!%p171_p3), %v987_v1  ;;  %954 = vmatpush3.bf16.msra.mxu1 (!%p171_p3), %v987_v1  ;;  %v992_v6 = vld [vmem:[%s1205_s1 + $0x58] sm:$0xff] (!%p171_p3)   ;;  %v994_v8 = vld [vmem:[%s1205_s1 + $0x60] sm:$0xff] (!%p171_p3)   ;;  %v996_v10 = vld [vmem:[%s1205_s1 + $0x68] sm:$0xff] (!%p171_p3)  }
   0x9   : > { %884 = vmatprep.subr.bf16.mxu0 (!%p171_p3), %v988_v2  ;;  %947 = vmatprep.subr.bf16.mxu1 (!%p171_p3), %v988_v2  ;;  %v993_v7 = vld [vmem:[%s1205_s1 + $0x18] sm:$0xff] (!%p171_p3)   ;;  %v995_v9 = vld [vmem:[%s1205_s1 + $0x20] sm:$0xff] (!%p171_p3)   ;;  %v997_v13 = vld [vmem:[%s1205_s1 + $0x28] sm:$0xff] (!%p171_p3)  }
   0xa   : > { %v998_v14 = vld [vmem:[%s1205_s1 + $0x70] sm:$0xff] (!%p171_p3)   ;;  %v1000_v16 = vld [vmem:[%s1205_s1 + $0x78] sm:$0xff] (!%p171_p3)   ;;  %v1163_v34 = vld [vmem:[%s1206_s2] ss:$0 sm:$0xff] (!%p171_p3) }
   0xb   : > { %v999_v15 = vld [vmem:[%s1205_s1 + $0x30] sm:$0xff] (!%p171_p3)   ;;  %v1001_v17 = vld [vmem:[%s1205_s1 + $0x38] sm:$0xff] (!%p171_p3)  }
   0xc   : > { %885 = vmatpush3.bf16.msra.mxu0 (!%p171_p3), %v989_v3  ;;  %955 = vmatpush3.bf16.msra.mxu1 (!%p171_p3), %v989_v3 }
   0xd   : > { %886 = vmatprep.subr.bf16.mxu0 (!%p171_p3), %v990_v4  ;;  %948 = vmatprep.subr.bf16.mxu1 (!%p171_p3), %v990_v4 }
   0xe   : > { %s1213_s18 = smov (!%p206_p4, %s762_s18), 63 }
   0xf   : > { %s818_s6 = sshll.u32 %s1213_s18, 3  ;;  %s766_s5 = sshll.u32 %s1213_s18, 2 }
  0x10   : > { %887 = vmatpush3.bf16.msra.mxu0 %v991_v5  ;;  %956 = vmatpush3.bf16.msra.mxu1 %v991_v5  ;;  %s1121_s11 = scalar_lea.vmem %s1204_s0, %s818_s6  ;;  %s1173_s8 = scalar_lea.vmem %s1207_s3, %s766_s5 }
  0x11   : > { %888 = vmatprep.subr.bf16.mxu0 %v992_v6  ;;  %949 = vmatprep.subr.bf16.mxu1 %v992_v6  ;;  %v1004_v11 = vld [vmem:[%s1121_s11 + $0x4] ss:$8 sps:$4 sm:$0xff]   ;;  %v1002_v18 = vld [vmem:[%s1121_s11] ss:$8 sps:$4 sm:$0xff]   ;;  %v1008_v20 = vld [vmem:[%s1121_s11 + $0x14] ss:$8 sps:$4 sm:$0xff]  }
  0x12   : > { %v1007_v12 = vld [vmem:[%s1121_s11 + $0x44] ss:$8 sps:$4 sm:$0xff]   ;;  %492 = vmatprep.mubr.bf16.mxu0 %v1004_v11  ;;  %v1005_v19 = vld [vmem:[%s1121_s11 + $0x40] ss:$8 sps:$4 sm:$0xff]   ;;  %v1010_v21 = vld [vmem:[%s1121_s11 + $0x54] ss:$8 sps:$4 sm:$0xff]  }
  0x13   : > { %524 = vmatprep.mubr.bf16.mxu1 %v1007_v12  ;;  %v1012_v22 = vld [vmem:[%s1121_s11 + $0x10] ss:$8 sps:$4 sm:$0xff]   ;;  %v1014_v24 = vld [vmem:[%s1121_s11 + $0x24] ss:$8 sps:$4 sm:$0xff]   ;;  %v1018_v26 = vld [vmem:[%s1121_s11 + $0x20] ss:$8 sps:$4 sm:$0xff]  }
  0x14   : > { %889 = vmatpush3.bf16.msra.mxu0 %v993_v7  ;;  %957 = vmatpush3.bf16.msra.mxu1 %v993_v7  ;;  %v1013_v23 = vld [vmem:[%s1121_s11 + $0x50] ss:$8 sps:$4 sm:$0xff]   ;;  %v1016_v25 = vld [vmem:[%s1121_s11 + $0x64] ss:$8 sps:$4 sm:$0xff]   ;;  %v1019_v27 = vld [vmem:[%s1121_s11 + $0x60] ss:$8 sps:$4 sm:$0xff]  }
  0x15   : > { %890 = vmatprep.subr.bf16.mxu0 %v994_v8  ;;  %950 = vmatprep.subr.bf16.mxu1 %v994_v8  ;;  %v1020_v28 = vld [vmem:[%s1121_s11 + $0x34] ss:$8 sps:$4 sm:$0xff]   ;;  %v1024_v30 = vld [vmem:[%s1121_s11 + $0x30] ss:$8 sps:$4 sm:$0xff]  }
  0x16   : > { %v1022_v29 = vld [vmem:[%s1121_s11 + $0x74] ss:$8 sps:$4 sm:$0xff]   ;;  %v1025_v31 = vld [vmem:[%s1121_s11 + $0x70] ss:$8 sps:$4 sm:$0xff]  }
  0x18   : > { %891 = vmatpush3.bf16.msra.mxu0 %v995_v9  ;;  %958 = vmatpush3.bf16.msra.mxu1 %v995_v9 }
  0x19   : > { %892 = vmatprep.subr.bf16.mxu0 %v996_v10  ;;  %951 = vmatprep.subr.bf16.mxu1 %v996_v10 }
  0x1c   : > { %893 = vmatpush3.bf16.msra.mxu0 %v997_v13  ;;  %959 = vmatpush3.bf16.msra.mxu1 %v997_v13 }
  0x1d   : > { %894 = vmatprep.subr.bf16.mxu0 %v998_v14  ;;  %952 = vmatprep.subr.bf16.mxu1 %v998_v14 }
  0x20   : > { %895 = vmatpush3.bf16.msra.mxu0 %v999_v15  ;;  %960 = vmatpush3.bf16.msra.mxu1 %v999_v15 }
  0x21   : > { %896 = vmatprep.subr.bf16.mxu0 %v1000_v16  ;;  %953 = vmatprep.subr.bf16.mxu1 %v1000_v16 }
  0x24   : > { %897 = vmatpush3.bf16.msra.mxu0 %v1001_v17  ;;  %961 = vmatpush3.bf16.msra.mxu1 %v1001_v17 }
  0x27   : > { %493 = vmatmul.mubr.bf16.vlgmr.msra.gmra.mrb[0].mxu0 %v1002_v18  ;;  %525 = vmatmul.mubr.bf16.vlgmr.msra.gmra.mrb[0].mxu1 %v1005_v19 }
  0x28   : > { %500 = vmatprep.mubr.bf16.mxu0 %v1008_v20  ;;  %532 = vmatprep.mubr.bf16.mxu1 %v1010_v21 }
  0x2f   : > { %501 = vmatmul.mubr.bf16.gmra.mrb[4].mxu0 %v1012_v22  ;;  %533 = vmatmul.mubr.bf16.gmra.mrb[4].mxu1 %v1013_v23 }
  0x30   : > { %508 = vmatprep.mubr.bf16.mxu0 %v1014_v24  ;;  %540 = vmatprep.mubr.bf16.mxu1 %v1016_v25 }
  0x37   : > { %509 = vmatmul.mubr.bf16.gmra.mrb[8].mxu0 %v1018_v26  ;;  %541 = vmatmul.mubr.bf16.gmra.mrb[8].mxu1 %v1019_v27 }
  0x38   : > { %516 = vmatprep.mubr.bf16.mxu0 %v1020_v28  ;;  %548 = vmatprep.mubr.bf16.mxu1 %v1022_v29 }
  0x3f   : > { %517 = vmatmul.mubr.bf16.gmra.mrb[12].mxu0 %v1024_v30  ;;  %549 = vmatmul.mubr.bf16.gmra.mrb[12].mxu1 %v1025_v31 }
  0xfa   : > { %v898_v32 = vpop.f32.mrb[0].mxu0  ;;  %v922_v33 = vpop.f32.mrb[0].mxu1 }
  0xfb   : > { %v899_v35 = vpop.f32.mrb[1].mxu0  ;;  %v923_v36 = vpop.f32.mrb[1].mxu1 }
  0xfc   : > { %v900_v37 = vadd.f32 %v899_v35, %v898_v32  ;;  %v924_v38 = vadd.f32 %v923_v36, %v922_v33  ;;  %v901_v39 = vpop.f32.mrb[2].mxu0  ;;  %v925_v40 = vpop.f32.mrb[2].mxu1 }
  0xfd   : > { %v902_v41 = vpop.f32.mrb[3].mxu0  ;;  %v926_v42 = vpop.f32.mrb[3].mxu1 }
  0xfe   : > { %v495_v43 = vadd.f32 %v900_v37, %v1163_v34  ;;  %v527_v44 = vadd.f32 %v924_v38, %v1163_v34  ;;  %v903_v45 = vadd.f32 %v902_v41, %v901_v39  ;;  %v927_v46 = vadd.f32 %v926_v42, %v925_v40 }
 0x100   : > { %v498_v47 = vadd.f32 %v903_v45, %v1163_v34  ;;  %v530_v48 = vadd.f32 %v927_v46, %v1163_v34  ;;  %v557_v49 = vmax.f32 %v495_v43, 0.0  ;;  %v565_v50 = vmax.f32 %v527_v44, 0.0 }
 0x102   : > { %v558_v51 = vmax.f32 %v498_v47, 0.0  ;;  %v566_v52 = vmax.f32 %v530_v48, 0.0  ;;  %v904_v53 = vpop.f32.mrb[4].mxu0  ;;  %v928_v54 = vpop.f32.mrb[4].mxu1 }
 0x103   : > { %v905_v55 = vpop.f32.mrb[5].mxu0  ;;  %v929_v56 = vpop.f32.mrb[5].mxu1 }
 0x104   : > { %v838_v57 = vpack.c.bf16 %v558_v51, %v557_v49  ;;  %v858_v58 = vpack.c.bf16 %v566_v52, %v565_v50  ;;  %v906_v59 = vadd.f32 %v905_v55, %v904_v53  ;;  %v930_v60 = vadd.f32 %v929_v56, %v928_v54  ;;  %v907_v61 = vpop.f32.mrb[6].mxu0  ;;  %v931_v62 = vpop.f32.mrb[6].mxu1 }
 0x105   : > { %v908_v63 = vpop.f32.mrb[7].mxu0  ;;  %v932_v0 = vpop.f32.mrb[7].mxu1 }
 0x106   : > { %839 = vst [vmem:[%s1173_s8] sm:$0xff] %v838_v57   ;;  %878 = vst [vmem:[%s1173_s8 + $0x20] sm:$0xff] %v858_v58   ;;  %v503_v1 = vadd.f32 %v906_v59, %v1163_v34  ;;  %v535_v2 = vadd.f32 %v930_v60, %v1163_v34  ;;  %v909_v3 = vadd.f32 %v908_v63, %v907_v61 }
 0x107   : > { %v933_v4 = vadd.f32 %v932_v0, %v931_v62 }
 0x108   : > { %v506_v5 = vadd.f32 %v909_v3, %v1163_v34  ;;  %v559_v7 = vmax.f32 %v503_v1, 0.0  ;;  %v567_v8 = vmax.f32 %v535_v2, 0.0 }
 0x109   : > { %v538_v6 = vadd.f32 %v933_v4, %v1163_v34 }
 0x10a   : > { %v560_v9 = vmax.f32 %v506_v5, 0.0  ;;  %v910_v11 = vpop.f32.mrb[8].mxu0  ;;  %v934_v12 = vpop.f32.mrb[8].mxu1 }
 0x10b   : > { %v568_v10 = vmax.f32 %v538_v6, 0.0  ;;  %v911_v13 = vpop.f32.mrb[9].mxu0  ;;  %v935_v14 = vpop.f32.mrb[9].mxu1 }
 0x10c   : > { %v843_v15 = vpack.c.bf16 %v560_v9, %v559_v7  ;;  %v912_v17 = vadd.f32 %v911_v13, %v910_v11  ;;  %v936_v18 = vadd.f32 %v935_v14, %v934_v12  ;;  %v913_v19 = vpop.f32.mrb[10].mxu0  ;;  %v937_v20 = vpop.f32.mrb[10].mxu1 }
 0x10d   : > { %v863_v16 = vpack.c.bf16 %v568_v10, %v567_v8  ;;  %v914_v21 = vpop.f32.mrb[11].mxu0  ;;  %v938_v22 = vpop.f32.mrb[11].mxu1 }
 0x10e   : > { %875 = vst [vmem:[%s1173_s8 + $0x8] sm:$0xff] %v843_v15   ;;  %v511_v23 = vadd.f32 %v912_v17, %v1163_v34  ;;  %v543_v24 = vadd.f32 %v936_v18, %v1163_v34  ;;  %v915_v25 = vadd.f32 %v914_v21, %v913_v19  ;;  %v939_v26 = vadd.f32 %v938_v22, %v937_v20 }
 0x10f   : > { %879 = vst [vmem:[%s1173_s8 + $0x28] sm:$0xff] %v863_v16  }
 0x110   : > { %v514_v27 = vadd.f32 %v915_v25, %v1163_v34  ;;  %v546_v28 = vadd.f32 %v939_v26, %v1163_v34  ;;  %v561_v29 = vmax.f32 %v511_v23, 0.0  ;;  %v569_v30 = vmax.f32 %v543_v24, 0.0 }
 0x112   : > { %v562_v31 = vmax.f32 %v514_v27, 0.0  ;;  %v570_v32 = vmax.f32 %v546_v28, 0.0  ;;  %v916_v33 = vpop.f32.mrb[12].mxu0  ;;  %v940_v35 = vpop.f32.mrb[12].mxu1 }
 0x113   : > { %v917_v36 = vpop.f32.mrb[13].mxu0  ;;  %v941_v37 = vpop.f32.mrb[13].mxu1 }
 0x114   : > { %v848_v38 = vpack.c.bf16 %v562_v31, %v561_v29  ;;  %v868_v39 = vpack.c.bf16 %v570_v32, %v569_v30  ;;  %v918_v40 = vadd.f32 %v917_v36, %v916_v33  ;;  %v942_v41 = vadd.f32 %v941_v37, %v940_v35  ;;  %v919_v42 = vpop.f32.mrb[14].mxu0  ;;  %v943_v43 = vpop.f32.mrb[14].mxu1 }
 0x115   : > { %v920_v44 = vpop.f32.mrb[15].mxu0  ;;  %v944_v45 = vpop.f32.mrb[15].mxu1 }
 0x116   : > { %876 = vst [vmem:[%s1173_s8 + $0x10] sm:$0xff] %v848_v38   ;;  %880 = vst [vmem:[%s1173_s8 + $0x30] sm:$0xff] %v868_v39   ;;  %v519_v46 = vadd.f32 %v918_v40, %v1163_v34  ;;  %v551_v47 = vadd.f32 %v942_v41, %v1163_v34  ;;  %v921_v48 = vadd.f32 %v920_v44, %v919_v42 }
 0x117   : > { %v945_v49 = vadd.f32 %v944_v45, %v943_v43 }
 0x118   : > { %v522_v50 = vadd.f32 %v921_v48, %v1163_v34  ;;  %v563_v52 = vmax.f32 %v519_v46, 0.0  ;;  %v571_v53 = vmax.f32 %v551_v47, 0.0 }
 0x119   : > { %v554_v51 = vadd.f32 %v945_v49, %v1163_v34 }
 0x11a   : > { %v564_v54 = vmax.f32 %v522_v50, 0.0 }
 0x11b   : > { %v572_v55 = vmax.f32 %v554_v51, 0.0 }
 0x11c   : > { %v853_v56 = vpack.c.bf16 %v564_v54, %v563_v52 }
 0x11d   : > { %v873_v57 = vpack.c.bf16 %v572_v55, %v571_v53 }
 0x11e   : > { %877 = vst [vmem:[%s1173_s8 + $0x18] sm:$0xff] %v853_v56  }
 0x11f   : > { %881 = vst [vmem:[%s1173_s8 + $0x38] sm:$0xff] %v873_v57  }
 0x120 PF: > { %s13_s14 = sadd.s32 1, %s1048_s14   ;;  %s1208_s12 = smov %s1044_s13 }
 0x121   : > { %p10_p5 = scmp.ge.s32.totalorder %s13_s14, 6   ;;  %s1209_s13 = smov %s1211_s15 }
 0x123   :  { %12 = sbr.rel (!%p10_p5) target bundleno = 2 (0x2), region = 68 }

// kernel: bottleneck_forward.5
= control target key start
LH: loop header
LB: loop body
LE: loop exit
PB: predicated region body
PF: predicated region fallthrough
CT: control target
= control target key end

     0   :  { %11 = vsyncpa [#allocation5], 0  ;;  %s2242_s0 = inlined_call_operand.vmem [shape: bf16[128,128], index: 0, kind: input, shape index: {}]   ;;  %s2243_s1 = inlined_call_operand.vmem [shape: bf16[128,512], index: 1, kind: input, shape index: {}]   ;;  %s2244_s2 = inlined_call_operand.vmem [shape: f32[1,512], index: 2, kind: input, shape index: {}]   ;;  %s2245_s3 = inlined_call_operand.vmem [shape: bf16[128,256], index: 3, kind: input, shape index: {}]   ;;  %s2246_s4 = inlined_call_operand.vmem [shape: bf16[256,512], index: 4, kind: input, shape index: {}]   ;;  %s2247_s5 = inlined_call_operand.vmem [shape: f32[1,512], index: 5, kind: input, shape index: {}]   ;;  %s2248_s6 = inlined_call_operand.hbm [shape: f32[128,512], index: 6, kind: output, shape index: {}]  }
   0x1   :  { %13 = vsyncpa [#allocation5 + $0x1], 0  ;;  %s1840_s21 = smov 0   ;;  %s1842_s22 = smov 0  }
   0x2   :  { %s1844_s23 = smov 0   ;;  %s1846_s24 = smov 0  }
   0x3   :  { %s1848_s25 = smov 0   ;;  %s1850_s26 = smov 0  }
   0x4 LB: > { %s1411_s27 = sadd.s32 4294967295, %s1799_s26   ;;  %s1412_s28 = sadd.s32 4294967294, %s1799_s26   ;;  %s1799_s26 = sphi %s1850_s26, %s19_s26   ;;  %s1795_s25 = sphi %s1848_s25, %s2256_s25   ;;  %s1791_s24 = sphi %s1846_s24, %s2255_s24   ;;  %s1787_s23 = sphi %s1844_s23, %s2254_s23   ;;  %s1783_s22 = sphi %s1842_s22, %s2253_s22   ;;  %s1779_s21 = sphi %s1840_s21, %s2252_s21  }
   0x5   : > { %s28_s29 = sadd.s32 1, %s1795_s25  ;;  %s64_s30 = sadd.s32 1, %s1787_s23 }
   0x6   : > { %p29_p0 = scmp.ge.s32.totalorder %s28_s29, 4  ;;  %p71_p1 = scmp.ne.s32.totalorder %s1787_s23, %s1783_s22 }
   0x7   : > { %p72_p2 = scmp.eq.s32.totalorder %s1799_s26, 0  ;;  %p207_p3 = scmp.eq.s32.totalorder %s1411_s27, 3 }
   0x8   : > { %s2258_s29 = smov (%p29_p0, %s28_s29), 0  ;;  %p212_p6 = scmp.ne.s32.totalorder %s1783_s22, %s1779_s21 }
   0x9   : > { %p1879_p4 = por %p72_p2, %p71_p1  ;;  %p1883_p5 = por %p207_p3, %p71_p1 }
   0xa   : > { %s61_s9 = ssub.s32 %s1795_s25, %s2258_s29  ;;  %p213_p8 = scmp.eq.s32.totalorder %s1412_s28, 3 }
   0xb   : > { %p62_p7 = scmp.eq.s32.totalorder %s61_s9, 0  ;;  %p1416_p10 = scmp.ge.s32.totalorder %s1799_s26, 4 }
   0xc   : > { %p1894_p9 = por %p213_p8, %p212_p6 }
   0xd   : > { %s1892_s10 = scalar_select %p62_p7, %s1787_s23, %s64_s30  }
   0xe   : > { %248 = sbr.rel (%p1416_p10) target bundleno = 61 (0x3d), region = 24 }
  0x15   : > { %251 = sbr.rel (!%p1879_p4) target bundleno = 36 (0x24), region = 28  ;;  %s253_s12 = sand.u32 (%p1879_p4), 1, %s1787_s23  }
  0x16   : > { %s1418_s13 = sshll.u32 (%p1879_p4), %s1795_s25, 2  ;;  %s1417_s14 = sshll.u32 (%p1879_p4), %s253_s12, 6 }
  0x17   : > { %s1906_s17 = scalar_lea.vmem (%p1879_p4), %s2243_s1, %s1418_s13  ;;  %s255_s18 = scalar_lea.vmem (%p1879_p4), [#allocation2], %s1417_s14 }
  0x18   : > { %v273_v0 = vld [vmem:[%s1906_s17] sm:$0xf] (%p1879_p4)  ;;  %v275_v1 = vld [vmem:[%s1906_s17 + $0x10] sm:$0xf] (%p1879_p4) }
  0x19   : > { %274 = vst [vmem:[%s255_s18] sm:$0xf] (%p1879_p4), %v273_v0  ;;  %276 = vst [vmem:[%s255_s18 + $0x4] sm:$0xf] (%p1879_p4), %v275_v1  ;;  %v277_v2 = vld [vmem:[%s1906_s17 + $0x20] sm:$0xf] (%p1879_p4) }
  0x1a   : > { %v279_v3 = vld [vmem:[%s1906_s17 + $0x30] sm:$0xf] (%p1879_p4)  ;;  %v281_v4 = vld [vmem:[%s1906_s17 + $0x40] sm:$0xf] (%p1879_p4)  ;;  %278 = vst [vmem:[%s255_s18 + $0x8] sm:$0xf] (%p1879_p4), %v277_v2 }
  0x1b   : > { %280 = vst [vmem:[%s255_s18 + $0xc] sm:$0xf] (%p1879_p4), %v279_v3  ;;  %282 = vst [vmem:[%s255_s18 + $0x10] sm:$0xf] (%p1879_p4), %v281_v4  ;;  %v283_v5 = vld [vmem:[%s1906_s17 + $0x50] sm:$0xf] (%p1879_p4) }
  0x1c   : > { %v285_v6 = vld [vmem:[%s1906_s17 + $0x60] sm:$0xf]  ;;  %v287_v7 = vld [vmem:[%s1906_s17 + $0x70] sm:$0xf]  ;;  %284 = vst [vmem:[%s255_s18 + $0x14] sm:$0xf] %v283_v5 }
  0x1d   : > { %286 = vst [vmem:[%s255_s18 + $0x18] sm:$0xf] %v285_v6  ;;  %288 = vst [vmem:[%s255_s18 + $0x1c] sm:$0xf] %v287_v7  ;;  %v289_v8 = vld [vmem:[%s1906_s17 + $0x80] sm:$0xf] }
  0x1e   : > { %v291_v9 = vld [vmem:[%s1906_s17 + $0x90] sm:$0xf]  ;;  %v293_v10 = vld [vmem:[%s1906_s17 + $0xa0] sm:$0xf]  ;;  %290 = vst [vmem:[%s255_s18 + $0x20] sm:$0xf] %v289_v8 }
  0x1f   : > { %292 = vst [vmem:[%s255_s18 + $0x24] sm:$0xf] %v291_v9  ;;  %294 = vst [vmem:[%s255_s18 + $0x28] sm:$0xf] %v293_v10  ;;  %v295_v11 = vld [vmem:[%s1906_s17 + $0xb0] sm:$0xf] }
  0x20   : > { %v297_v12 = vld [vmem:[%s1906_s17 + $0xc0] sm:$0xf]  ;;  %v299_v13 = vld [vmem:[%s1906_s17 + $0xd0] sm:$0xf]  ;;  %296 = vst [vmem:[%s255_s18 + $0x2c] sm:$0xf] %v295_v11 }
  0x21   : > { %298 = vst [vmem:[%s255_s18 + $0x30] sm:$0xf] %v297_v12  ;;  %300 = vst [vmem:[%s255_s18 + $0x34] sm:$0xf] %v299_v13  ;;  %v301_v14 = vld [vmem:[%s1906_s17 + $0xe0] sm:$0xf] }
  0x22   : > { %v303_v15 = vld [vmem:[%s1906_s17 + $0xf0] sm:$0xf]  ;;  %302 = vst [vmem:[%s255_s18 + $0x38] sm:$0xf] %v301_v14 }
  0x23   : > { %304 = vst [vmem:[%s255_s18 + $0x3c] sm:$0xf] %v303_v15 }
  0x24 PF: > { %365 = sbr.rel (!%p1879_p4) target bundleno = 61 (0x3d), region = 73  ;;  %s367_s19 = sand.u32 (%p1879_p4), 1, %s1787_s23  }
  0x25   : > { %s1420_s20 = sshll.u32 (%p1879_p4), %s1795_s25, 2  ;;  %s1419_s27 = sshll.u32 (%p1879_p4), %s367_s19, 7 }
  0x26   : > { %s1931_s9 = scalar_lea.vmem (%p1879_p4), %s2246_s4, %s1420_s20  ;;  %s1935_s7 = scalar_lea.vmem (%p1879_p4), [#allocation3], %s1419_s27 }
  0x27   : > { %v387_v16 = vld [vmem:[%s1931_s9] sm:$0xf] (%p1879_p4)  ;;  %v389_v17 = vld [vmem:[%s1931_s9 + $0x10] sm:$0xf] (%p1879_p4) }
  0x28   : > { %388 = vst [vmem:[%s1935_s7] sm:$0xf] (%p1879_p4), %v387_v16  ;;  %390 = vst [vmem:[%s1935_s7 + $0x4] sm:$0xf] (%p1879_p4), %v389_v17  ;;  %v391_v18 = vld [vmem:[%s1931_s9 + $0x20] sm:$0xf] (%p1879_p4) }
  0x29   : > { %v393_v19 = vld [vmem:[%s1931_s9 + $0x30] sm:$0xf] (%p1879_p4)  ;;  %v395_v20 = vld [vmem:[%s1931_s9 + $0x40] sm:$0xf] (%p1879_p4)  ;;  %392 = vst [vmem:[%s1935_s7 + $0x8] sm:$0xf] (%p1879_p4), %v391_v18 }
  0x2a   : > { %394 = vst [vmem:[%s1935_s7 + $0xc] sm:$0xf] (%p1879_p4), %v393_v19  ;;  %396 = vst [vmem:[%s1935_s7 + $0x10] sm:$0xf] (%p1879_p4), %v395_v20  ;;  %v397_v21 = vld [vmem:[%s1931_s9 + $0x50] sm:$0xf] (%p1879_p4) }
  0x2b   : > { %v399_v22 = vld [vmem:[%s1931_s9 + $0x60] sm:$0xf]  ;;  %v401_v23 = vld [vmem:[%s1931_s9 + $0x70] sm:$0xf]  ;;  %398 = vst [vmem:[%s1935_s7 + $0x14] sm:$0xf] %v397_v21 }
  0x2c   : > { %400 = vst [vmem:[%s1935_s7 + $0x18] sm:$0xf] %v399_v22  ;;  %402 = vst [vmem:[%s1935_s7 + $0x1c] sm:$0xf] %v401_v23  ;;  %v403_v24 = vld [vmem:[%s1931_s9 + $0x80] sm:$0xf] }
  0x2d   : > { %v405_v25 = vld [vmem:[%s1931_s9 + $0x90] sm:$0xf]  ;;  %v407_v26 = vld [vmem:[%s1931_s9 + $0xa0] sm:$0xf]  ;;  %404 = vst [vmem:[%s1935_s7 + $0x20] sm:$0xf] %v403_v24 }
  0x2e   : > { %406 = vst [vmem:[%s1935_s7 + $0x24] sm:$0xf] %v405_v25  ;;  %408 = vst [vmem:[%s1935_s7 + $0x28] sm:$0xf] %v407_v26  ;;  %v409_v27 = vld [vmem:[%s1931_s9 + $0xb0] sm:$0xf] }
  0x2f   : > { %v411_v28 = vld [vmem:[%s1931_s9 + $0xc0] sm:$0xf]  ;;  %v413_v29 = vld [vmem:[%s1931_s9 + $0xd0] sm:$0xf]  ;;  %410 = vst [vmem:[%s1935_s7 + $0x2c] sm:$0xf] %v409_v27 }
  0x30   : > { %412 = vst [vmem:[%s1935_s7 + $0x30] sm:$0xf] %v411_v28  ;;  %414 = vst [vmem:[%s1935_s7 + $0x34] sm:$0xf] %v413_v29  ;;  %v415_v30 = vld [vmem:[%s1931_s9 + $0xe0] sm:$0xf] }
  0x31   : > { %v417_v31 = vld [vmem:[%s1931_s9 + $0xf0] sm:$0xf]  ;;  %v419_v32 = vld [vmem:[%s1931_s9 + $0x100] sm:$0xf]  ;;  %416 = vst [vmem:[%s1935_s7 + $0x38] sm:$0xf] %v415_v30 }
  0x32   : > { %418 = vst [vmem:[%s1935_s7 + $0x3c] sm:$0xf] %v417_v31  ;;  %420 = vst [vmem:[%s1935_s7 + $0x40] sm:$0xf] %v419_v32  ;;  %v421_v33 = vld [vmem:[%s1931_s9 + $0x110] sm:$0xf] }
  0x33   : > { %v423_v34 = vld [vmem:[%s1931_s9 + $0x120] sm:$0xf]  ;;  %v425_v35 = vld [vmem:[%s1931_s9 + $0x130] sm:$0xf]  ;;  %422 = vst [vmem:[%s1935_s7 + $0x44] sm:$0xf] %v421_v33 }
  0x34   : > { %424 = vst [vmem:[%s1935_s7 + $0x48] sm:$0xf] %v423_v34  ;;  %426 = vst [vmem:[%s1935_s7 + $0x4c] sm:$0xf] %v425_v35  ;;  %v427_v36 = vld [vmem:[%s1931_s9 + $0x140] sm:$0xf] }
  0x35   : > { %v429_v37 = vld [vmem:[%s1931_s9 + $0x150] sm:$0xf]  ;;  %v431_v38 = vld [vmem:[%s1931_s9 + $0x160] sm:$0xf]  ;;  %428 = vst [vmem:[%s1935_s7 + $0x50] sm:$0xf] %v427_v36 }
  0x36   : > { %430 = vst [vmem:[%s1935_s7 + $0x54] sm:$0xf] %v429_v37  ;;  %432 = vst [vmem:[%s1935_s7 + $0x58] sm:$0xf] %v431_v38  ;;  %v433_v39 = vld [vmem:[%s1931_s9 + $0x170] sm:$0xf] }
  0x37   : > { %v435_v40 = vld [vmem:[%s1931_s9 + $0x180] sm:$0xf]  ;;  %v437_v41 = vld [vmem:[%s1931_s9 + $0x190] sm:$0xf]  ;;  %434 = vst [vmem:[%s1935_s7 + $0x5c] sm:$0xf] %v433_v39 }
  0x38   : > { %436 = vst [vmem:[%s1935_s7 + $0x60] sm:$0xf] %v435_v40  ;;  %438 = vst [vmem:[%s1935_s7 + $0x64] sm:$0xf] %v437_v41  ;;  %v439_v42 = vld [vmem:[%s1931_s9 + $0x1a0] sm:$0xf] }
  0x39   : > { %v441_v43 = vld [vmem:[%s1931_s9 + $0x1b0] sm:$0xf]  ;;  %v443_v44 = vld [vmem:[%s1931_s9 + $0x1c0] sm:$0xf]  ;;  %440 = vst [vmem:[%s1935_s7 + $0x68] sm:$0xf] %v439_v42 }
  0x3a   : > { %442 = vst [vmem:[%s1935_s7 + $0x6c] sm:$0xf] %v441_v43  ;;  %444 = vst [vmem:[%s1935_s7 + $0x70] sm:$0xf] %v443_v44  ;;  %v445_v45 = vld [vmem:[%s1931_s9 + $0x1d0] sm:$0xf] }
  0x3b   : > { %v447_v46 = vld [vmem:[%s1931_s9 + $0x1e0] sm:$0xf]  ;;  %v449_v47 = vld [vmem:[%s1931_s9 + $0x1f0] sm:$0xf]  ;;  %446 = vst [vmem:[%s1935_s7 + $0x74] sm:$0xf] %v445_v45 }
  0x3c   : > { %448 = vst [vmem:[%s1935_s7 + $0x78] sm:$0xf] %v447_v46  ;;  %450 = vst [vmem:[%s1935_s7 + $0x7c] sm:$0xf] %v449_v47 }
  0x3d PF: > { %p1421_p11 = scmp.ge.s32.totalorder %s1799_s26, 1  ;;  %p542_p12 = scmp.lt.s32.totalorder %s1799_s26, 5 }
  0x3f   : > { %p543_p13 = pnand %p1421_p11, %p542_p12 }
  0x40   : > { %s2002_s12 = sand.u32 (!%p543_p13), 1, %s1783_s22   ;;  %v1689_v48 = vld [vmem:[%s2242_s0] sm:$0xff] (!%p543_p13)   ;;  %v1693_v10 = vld [vmem:[%s2242_s0 + $0x8] sm:$0xff] (!%p543_p13)   ;;  %v1694_v12 = vld [vmem:[%s2242_s0 + $0x10] sm:$0xff] (!%p543_p13)   ;;  %p612_p0 = scmp.lt.s32.totalorder (!%p543_p13), %s1791_s24, 3 }
  0x41   : > { %546 = sbr.rel (%p543_p13) target bundleno = 380 (0x17c), region = 118  ;;  %s1422_s15 = sshll.u32 (!%p543_p13), %s2002_s12, 6  ;;  %1575 = vmatprep.mubr.bf16.mxu0 (!%p543_p13), %v1689_v48  ;;  %v1692_v49 = vld [vmem:[%s2245_s3 + $0x24] ss:$8 sps:$4 sm:$0xff] (!%p543_p13)   ;;  %v1690_v11 = vld [vmem:[%s2245_s3 + $0x20] ss:$8 sps:$4 sm:$0xff] (!%p543_p13)  }
  0x42   : > { %s1423_s16 = sshll.u32 (!%p543_p13), %s2002_s12, 7  ;;  %s2012_s19 = scalar_lea.vmem (!%p543_p13), [#allocation2], %s1422_s15  ;;  %1131 = vmatprep.mubr.bf16.mxu1 (!%p543_p13), %v1692_v49  ;;  %v1695_v13 = vld [vmem:[%s2245_s3 + $0x34] ss:$8 sps:$4 sm:$0xff] (!%p543_p13)   ;;  %v1698_v15 = vld [vmem:[%s2245_s3 + $0x30] ss:$8 sps:$4 sm:$0xff] (!%p543_p13)  }
  0x43   : > { %v1665_v50 = vld [vmem:[%s2012_s19] sm:$0xff] (!%p543_p13)   ;;  %s2017_s20 = scalar_lea.vmem (!%p543_p13), [#allocation3], %s1423_s16  ;;  %v1668_v53 = vld [vmem:[%s2012_s19 + $0x8] sm:$0xff] (!%p543_p13)   ;;  %v1671_v56 = vld [vmem:[%s2012_s19 + $0x10] sm:$0xff] (!%p543_p13)   ;;  %s2138_s9 = scalar_lea.vmem (!%p543_p13), [#allocation4], %s1423_s16 }
  0x44   : > { %v1666_v51 = vld [vmem:[%s2017_s20 + $0x40] sm:$0xff] (!%p543_p13)   ;;  %1559 = vmatprep.subr.bf16.mxu0 (!%p543_p13), %v1665_v50  ;;  %v1669_v54 = vld [vmem:[%s2017_s20 + $0x48] sm:$0xff] (!%p543_p13)   ;;  %v1672_v57 = vld [vmem:[%s2017_s20 + $0x50] sm:$0xff] (!%p543_p13)   ;;  %s1476_s16 = sshll.u32 (!%p543_p13), %s1791_s24, 7  ;;  %s1267_s7 = sshll.u32 (!%p543_p13), %s2138_s9, 4  ;;  %s2191_s7 = int_to_ptr.vmem [resolvable:$true] %s1267_s7 }
  0x45   : > { %v1667_v52 = vld [vmem:[%s2017_s20] sm:$0xff] (!%p543_p13)   ;;  %1591 = vmatprep.subr.bf16.mxu1 (!%p543_p13), %v1666_v51  ;;  %1560 = vmatpush3.bf16.msra.mxu0 (!%p543_p13), %v1665_v50  ;;  %v1670_v55 = vld [vmem:[%s2017_s20 + $0x8] sm:$0xff] (!%p543_p13)   ;;  %v1673_v58 = vld [vmem:[%s2017_s20 + $0x10] sm:$0xff] (!%p543_p13)   ;;  %s2188_s15 = scalar_lea.hbm (!%p543_p13), %s2248_s6, %s1476_s16  ;;  %s1801_s18 = smov (!%p543_p13), [#allocation4]  }
  0x46   : > { %1599 = vmatpush3.bf16.msra.mxu1 (!%p543_p13), %v1667_v52  ;;  %1561 = vmatprep.subr.bf16.mxu0 (!%p543_p13), %v1668_v53  ;;  %v1674_v59 = vld [vmem:[%s2012_s19 + $0x18] sm:$0xff] (!%p543_p13)   ;;  %v1677_v62 = vld [vmem:[%s2012_s19 + $0x20] sm:$0xff] (!%p543_p13)   ;;  %v1680_v1 = vld [vmem:[%s2012_s19 + $0x28] sm:$0xff] (!%p543_p13)  }
  0x47   : > { %1592 = vmatprep.subr.bf16.mxu1 (!%p543_p13), %v1669_v54  ;;  %v1675_v60 = vld [vmem:[%s2017_s20 + $0x58] sm:$0xff] (!%p543_p13)   ;;  %v1678_v63 = vld [vmem:[%s2017_s20 + $0x60] sm:$0xff] (!%p543_p13)   ;;  %v1681_v2 = vld [vmem:[%s2017_s20 + $0x68] sm:$0xff] (!%p543_p13)  }
  0x48   : > { %v1676_v61 = vld [vmem:[%s2017_s20 + $0x18] sm:$0xff]   ;;  %v1679_v0 = vld [vmem:[%s2017_s20 + $0x20] sm:$0xff]   ;;  %v1682_v3 = vld [vmem:[%s2017_s20 + $0x28] sm:$0xff]   ;;  %s613_s17 = scalar_select %p612_p0, %s1791_s24, 3 }
  0x49   : > { %1562 = vmatpush3.bf16.msra.mxu0 %v1668_v53  ;;  %v1683_v4 = vld [vmem:[%s2012_s19 + $0x30] sm:$0xff]   ;;  %v1686_v7 = vld [vmem:[%s2012_s19 + $0x38] sm:$0xff]   ;;  %v1699_v16 = vld [vmem:[%s2242_s0 + $0x20] sm:$0xff]   ;;  %s1252_s24 = scalar_lea.sflag [#allocation5], %s2002_s12  ;;  %s1725_s19 = sshll.u32 %s1801_s18, 4  ;;  %s1726_s19 = int_to_ptr.vmem [resolvable:$false] %s1725_s19 }
  0x4a   : > { %1600 = vmatpush3.bf16.msra.mxu1 %v1670_v55  ;;  %1563 = vmatprep.subr.bf16.mxu0 %v1671_v56  ;;  %v1684_v5 = vld [vmem:[%s2017_s20 + $0x70] sm:$0xff]   ;;  %v1687_v8 = vld [vmem:[%s2017_s20 + $0x78] sm:$0xff]   ;;  %v1700_v17 = vld [vmem:[%s2245_s3 + $0x44] ss:$8 sps:$4 sm:$0xff]   ;;  %s624_s30 = scalar_lea.vmem %s2247_s5, %s613_s17  ;;  %p1728_p4 = scmp.lt.s32.totalorder %s2191_s7, %s1726_s19 }
  0x4b   : > { %1593 = vmatprep.subr.bf16.mxu1 %v1672_v57  ;;  %v1685_v6 = vld [vmem:[%s2017_s20 + $0x30] sm:$0xff]   ;;  %v1688_v9 = vld [vmem:[%s2017_s20 + $0x38] sm:$0xff]   ;;  %v1702_v18 = vld [vmem:[%s2242_s0 + $0x28] sm:$0xff]   ;;  %s614_s20 = scalar_lea.vmem %s2244_s2, %s613_s17  ;;  %s1721_s17 = scalar_lea.vmem %s2191_s7, 2048 }
  0x4c   : > { %v1697_v14 = vld [vmem:[%s2242_s0 + $0x18] sm:$0xff]   ;;  %v1703_v19 = vld [vmem:[%s2245_s3 + $0x40] ss:$8 sps:$4 sm:$0xff]   ;;  %v1704_v20 = vld [vmem:[%s2242_s0 + $0x30] sm:$0xff]   ;;  %p1722_p1 = scmp.ne.s32.totalorder %s2191_s7, %s1721_s17 }
  0x4d   : > { %1564 = vmatpush3.bf16.msra.mxu0 %v1671_v56  ;;  %v1705_v21 = vld [vmem:[%s2245_s3 + $0x54] ss:$8 sps:$4 sm:$0xff]   ;;  %v1708_v23 = vld [vmem:[%s2245_s3 + $0x50] ss:$8 sps:$4 sm:$0xff]   ;;  %v1711_v24 = vld [vmem:[%s2245_s3 + $0x4] ss:$8 sps:$4 sm:$0xff]  }
  0x4e   : > { %1601 = vmatpush3.bf16.msra.mxu1 %v1673_v58  ;;  %1565 = vmatprep.subr.bf16.mxu0 %v1674_v59  ;;  %v1707_v22 = vld [vmem:[%s2242_s0 + $0x38] sm:$0xff]   ;;  %v1712_v25 = vld [vmem:[%s2245_s3 + $0x64] ss:$8 sps:$4 sm:$0xff]   ;;  %v1709_v26 = vld [vmem:[%s2245_s3] ss:$8 sps:$4 sm:$0xff]   ;;  %p1723_p2 = pnand %p1722_p1, %p1883_p5 }
  0x4f   : > { %1594 = vmatprep.subr.bf16.mxu1 %v1675_v60  ;;  %v1714_v27 = vld [vmem:[%s2245_s3 + $0x60] ss:$8 sps:$4 sm:$0xff]   ;;  %v1715_v28 = vld [vmem:[%s2245_s3 + $0x14] ss:$8 sps:$4 sm:$0xff]   ;;  %v1719_v30 = vld [vmem:[%s2245_s3 + $0x10] ss:$8 sps:$4 sm:$0xff]  }
  0x50   : > { %v1717_v29 = vld [vmem:[%s2245_s3 + $0x74] ss:$8 sps:$4 sm:$0xff]   ;;  %v1720_v31 = vld [vmem:[%s2245_s3 + $0x70] ss:$8 sps:$4 sm:$0xff]   ;;  %v2121_v42 = vld [vmem:[%s614_s20] ss:$0 sm:$0xff]  ;;  %p1724_p3 = pneg %p1723_p2 }
  0x51   : > { %1566 = vmatpush3.bf16.msra.mxu0 %v1674_v59  ;;  %v2128_v50 = vld [vmem:[%s624_s30] ss:$0 sm:$0xff]  ;;  %s1727_s20 = scalar_lea.vmem %s1726_s19, 4096 }
  0x52   : > { %1602 = vmatpush3.bf16.msra.mxu1 %v1676_v61  ;;  %1567 = vmatprep.subr.bf16.mxu0 %v1677_v62  ;;  %p1729_p6 = scmp.lt.s32.totalorder %s1727_s20, %s1721_s17 }
  0x53   : > { %1595 = vmatprep.subr.bf16.mxu1 %v1678_v63 }
  0x54   : > { %p1730_p7 = por %p1729_p6, %p1728_p4 }
  0x55   : > { %1568 = vmatpush3.bf16.msra.mxu0 %v1677_v62 }
  0x56   : > { %1603 = vmatpush3.bf16.msra.mxu1 %v1679_v0  ;;  %1569 = vmatprep.subr.bf16.mxu0 %v1680_v1  ;;  %p1731_p8 = pnand %p1730_p7, %p1724_p3 }
  0x57   : > { %1596 = vmatprep.subr.bf16.mxu1 %v1681_v2 }
  0x59   : > { %1570 = vmatpush3.bf16.msra.mxu0 %v1680_v1 }
  0x5a   : > { %1604 = vmatpush3.bf16.msra.mxu1 %v1682_v3  ;;  %1571 = vmatprep.subr.bf16.mxu0 %v1683_v4 }
  0x5b   : > { %1597 = vmatprep.subr.bf16.mxu1 %v1684_v5 }
  0x5d   : > { %1572 = vmatpush3.bf16.msra.mxu0 %v1683_v4 }
  0x5e   : > { %1605 = vmatpush3.bf16.msra.mxu1 %v1685_v6  ;;  %1573 = vmatprep.subr.bf16.mxu0 %v1686_v7 }
  0x5f   : > { %1598 = vmatprep.subr.bf16.mxu1 %v1687_v8 }
  0x61   : > { %1574 = vmatpush3.bf16.msra.mxu0 %v1686_v7 }
  0x62   : > { %1606 = vmatpush3.bf16.msra.mxu1 %v1688_v9  ;;  %1495 = vmatprep.subr.bf16.mxu0 %v1666_v51 }
  0x64   : > { %1576 = vmatmul.mubr.bf16.vlgmr.msra.gmra.mrb[0].mxu0 %v1693_v10 }
  0x65   : > { %1132 = vmatmul.mubr.bf16.vlgmr.msra.gmra.mrb[0].mxu1 %v1690_v11  ;;  %1496 = vmatpush3.bf16.msra.mxu0 %v1667_v52 }
  0x66   : > { %1497 = vmatprep.subr.bf16.mxu0 %v1669_v54  ;;  %1579 = vmatprep.mubr.bf16.mxu0 %v1694_v12 }
  0x67   : > { %1139 = vmatprep.mubr.bf16.mxu1 %v1695_v13 }
  0x69   : > { %1498 = vmatpush3.bf16.msra.mxu0 %v1670_v55 }
  0x6a   : > { %1499 = vmatprep.subr.bf16.mxu0 %v1672_v57 }
  0x6c   : > { %1580 = vmatmul.mubr.bf16.gmra.mrb[4].mxu0 %v1697_v14 }
  0x6d   : > { %1140 = vmatmul.mubr.bf16.gmra.mrb[4].mxu1 %v1698_v15  ;;  %1500 = vmatpush3.bf16.msra.mxu0 %v1673_v58 }
  0x6e   : > { %1501 = vmatprep.subr.bf16.mxu0 %v1675_v60  ;;  %1583 = vmatprep.mubr.bf16.mxu0 %v1699_v16 }
  0x6f   : > { %1147 = vmatprep.mubr.bf16.mxu1 %v1700_v17 }
  0x71   : > { %1502 = vmatpush3.bf16.msra.mxu0 %v1676_v61 }
  0x72   : > { %1503 = vmatprep.subr.bf16.mxu0 %v1678_v63 }
  0x74   : > { %1584 = vmatmul.mubr.bf16.gmra.mrb[8].mxu0 %v1702_v18 }
  0x75   : > { %1148 = vmatmul.mubr.bf16.gmra.mrb[8].mxu1 %v1703_v19  ;;  %1504 = vmatpush3.bf16.msra.mxu0 %v1679_v0 }
  0x76   : > { %1505 = vmatprep.subr.bf16.mxu0 %v1681_v2  ;;  %1587 = vmatprep.mubr.bf16.mxu0 %v1704_v20 }
  0x77   : > { %1155 = vmatprep.mubr.bf16.mxu1 %v1705_v21 }
  0x79   : > { %1506 = vmatpush3.bf16.msra.mxu0 %v1682_v3 }
  0x7a   : > { %1507 = vmatprep.subr.bf16.mxu0 %v1684_v5 }
  0x7c   : > { %1588 = vmatmul.mubr.bf16.gmra.mrb[12].mxu0 %v1707_v22 }
  0x7d   : > { %1156 = vmatmul.mubr.bf16.gmra.mrb[12].mxu1 %v1708_v23  ;;  %1508 = vmatpush3.bf16.msra.mxu0 %v1685_v6 }
  0x7e   : > { %1509 = vmatprep.subr.bf16.mxu0 %v1687_v8  ;;  %1115 = vmatprep.mubr.bf16.mxu0 %v1711_v24 }
  0x7f   : > { %1163 = vmatprep.mubr.bf16.mxu1 %v1712_v25 }
  0x81   : > { %1510 = vmatpush3.bf16.msra.mxu0 %v1688_v9 }
  0x84   : > { %1116 = vmatmul.mubr.bf16.vlgmr.msra.gmra.mrb[16].mxu0 %v1709_v26 }
  0x85   : > { %1164 = vmatmul.mubr.bf16.gmra.mrb[16].mxu1 %v1714_v27  ;;  %1123 = vmatprep.mubr.bf16.mxu0 %v1715_v28 }
  0x86   : > { %1171 = vmatprep.mubr.bf16.mxu1 %v1717_v29 }
  0x8c   : > { %1124 = vmatmul.mubr.bf16.gmra.mrb[20].mxu0 %v1719_v30 }
  0x8d   : > { %1172 = vmatmul.mubr.bf16.gmra.mrb[20].mxu1 %v1720_v31 }
 0x137   : > { %v2109_v32 = vpop.f32.mrb[0].mxu0 }
 0x138   : > { %v1523_v33 = vpop.f32.mrb[0].mxu1  ;;  %v2112_v34 = vpop.f32.mrb[1].mxu0 }
 0x139   : > { %v1524_v35 = vpop.f32.mrb[1].mxu1  ;;  %v2114_v36 = vpop.f32.mrb[2].mxu0 }
 0x13a   : > { %v1525_v37 = vadd.f32 %v1524_v35, %v1523_v33  ;;  %v1526_v38 = vpop.f32.mrb[2].mxu1  ;;  %v2116_v39 = vpop.f32.mrb[3].mxu0 }
 0x13b   : > { %v1527_v40 = vpop.f32.mrb[3].mxu1 }
 0x13c   : > { %v1528_v41 = vadd.f32 %v1527_v40, %v1526_v38 }
 0x13f   : > { %v1581_v43 = vpop.f32.mrb[4].mxu0 }
 0x140   : > { %v821_v44 = vadd.f32 %v1581_v43, %v2121_v42  ;;  %v1529_v45 = vpop.f32.mrb[4].mxu1  ;;  %v812_v46 = vpop.f32.mrb[5].mxu0 }
 0x141   : > { %v813_v47 = vadd.f32 %v2121_v42, %v812_v46  ;;  %v1530_v48 = vpop.f32.mrb[5].mxu1  ;;  %v1582_v49 = vpop.f32.mrb[6].mxu0 }
 0x142   : > { %v1531_v51 = vadd.f32 %v1530_v48, %v1529_v45  ;;  %v824_v52 = vadd.f32 %v1582_v49, %v2121_v42  ;;  %v1532_v53 = vpop.f32.mrb[6].mxu1  ;;  %v815_v54 = vpop.f32.mrb[7].mxu0  ;;  %v797_v49 = vadd.f32 %v2121_v42, %v2112_v34 }
 0x143   : > { %v1184_v55 = vadd.f32 %v1525_v37, %v813_v47  ;;  %v816_v56 = vadd.f32 %v2121_v42, %v815_v54  ;;  %v1533_v57 = vpop.f32.mrb[7].mxu1 }
 0x144   : > { %v1186_v58 = vadd.f32 %v1531_v51, %v821_v44  ;;  %v1534_v59 = vadd.f32 %v1533_v57, %v1532_v53 }
 0x145   : > { %v1207_v60 = vadd.f32 %v2128_v50, %v1184_v55  ;;  %v1185_v61 = vadd.f32 %v1528_v41, %v816_v56 }
 0x146   : > { %v1209_v62 = vadd.f32 %v2128_v50, %v1186_v58  ;;  %v1187_v63 = vadd.f32 %v1534_v59, %v824_v52  ;;  %v800_v59 = vadd.f32 %v2121_v42, %v2116_v39 }
 0x147   : > { %v1223_v0 = vmax.f32 %v1207_v60, 0.0  ;;  %v1208_v1 = vadd.f32 %v2128_v50, %v1185_v61  ;;  %v1585_v2 = vpop.f32.mrb[8].mxu0 }
 0x148   : > { %v1225_v3 = vmax.f32 %v1209_v62, 0.0  ;;  %v1210_v4 = vadd.f32 %v2128_v50, %v1187_v63  ;;  %v1535_v5 = vpop.f32.mrb[8].mxu1  ;;  %v828_v6 = vpop.f32.mrb[9].mxu0  ;;  %v837_v28 = vadd.f32 %v1585_v2, %v2121_v42 }
 0x149   : > { %1239 = vst [vmem:[%s2138_s9 + $0x20] sm:$0xff] %v1223_v0  ;;  %v1224_v7 = vmax.f32 %v1208_v1, 0.0  ;;  %v829_v8 = vadd.f32 %v2121_v42, %v828_v6  ;;  %v1536_v9 = vpop.f32.mrb[9].mxu1  ;;  %v1586_v10 = vpop.f32.mrb[10].mxu0 }
 0x14a   : > { %1241 = vst [vmem:[%s2138_s9 + $0x30] sm:$0xff] %v1225_v3  ;;  %v1226_v11 = vmax.f32 %v1210_v4, 0.0  ;;  %v1537_v12 = vadd.f32 %v1536_v9, %v1535_v5  ;;  %v1538_v13 = vpop.f32.mrb[10].mxu1  ;;  %v831_v14 = vpop.f32.mrb[11].mxu0  ;;  %v840_v37 = vadd.f32 %v1586_v10, %v2121_v42 }
 0x14b   : > { %1240 = vst [vmem:[%s2138_s9 + $0x28] sm:$0xff] %v1224_v7  ;;  %v832_v15 = vadd.f32 %v2121_v42, %v831_v14  ;;  %v1539_v16 = vpop.f32.mrb[11].mxu1 }
 0x14c   : > { %1242 = vst [vmem:[%s2138_s9 + $0x38] sm:$0xff] %v1226_v11  ;;  %v1188_v17 = vadd.f32 %v1537_v12, %v829_v8  ;;  %v1540_v18 = vadd.f32 %v1539_v16, %v1538_v13  ;;  %v805_v11 = vadd.f32 %v2109_v32, %v2121_v42 }
 0x14e   : > { %v1211_v19 = vadd.f32 %v2128_v50, %v1188_v17  ;;  %v1189_v20 = vadd.f32 %v1540_v18, %v832_v15 }
 0x14f   : > { %v1589_v21 = vpop.f32.mrb[12].mxu0 }
 0x150   : > { %v1227_v22 = vmax.f32 %v1211_v19, 0.0  ;;  %v1212_v23 = vadd.f32 %v2128_v50, %v1189_v20  ;;  %v1541_v24 = vpop.f32.mrb[12].mxu1  ;;  %v844_v25 = vpop.f32.mrb[13].mxu0  ;;  %v853_v16 = vadd.f32 %v1589_v21, %v2121_v42 }
 0x151   : > { %v1542_v26 = vpop.f32.mrb[13].mxu1  ;;  %v2148_v27 = vpop.f32.mrb[14].mxu0  ;;  %v845_v54 = vadd.f32 %v2121_v42, %v844_v25 }
 0x152   : > { %1243 = vst [vmem:[%s2138_s9 + $0x40] sm:$0xff] %v1227_v22  ;;  %v1228_v29 = vmax.f32 %v1212_v23, 0.0  ;;  %v1543_v30 = vadd.f32 %v1542_v26, %v1541_v24  ;;  %v1544_v31 = vpop.f32.mrb[14].mxu1  ;;  %v847_v33 = vpop.f32.mrb[15].mxu0  ;;  %v808_v22 = vadd.f32 %v2114_v36, %v2121_v42  ;;  %v856_v25 = vadd.f32 %v2148_v27, %v2121_v42 }
 0x153   : > { %v1545_v35 = vpop.f32.mrb[15].mxu1  ;;  %v848_v63 = vadd.f32 %v2121_v42, %v847_v33 }
 0x154   : > { %1244 = vst [vmem:[%s2138_s9 + $0x48] sm:$0xff] %v1228_v29  ;;  %v1190_v38 = vadd.f32 %v1543_v30, %v837_v28  ;;  %v1546_v40 = vadd.f32 %v1545_v35, %v1544_v31 }
 0x156   : > { %v1213_v41 = vadd.f32 %v2128_v50, %v1190_v38  ;;  %v1191_v43 = vadd.f32 %v1546_v40, %v840_v37 }
 0x157   : > { %v1511_v44 = vpop.f32.mrb[16].mxu0 }
 0x158   : > { %v1229_v45 = vmax.f32 %v1213_v41, 0.0  ;;  %v1214_v46 = vadd.f32 %v2128_v50, %v1191_v43  ;;  %v1547_v47 = vpop.f32.mrb[16].mxu1  ;;  %v1512_v48 = vpop.f32.mrb[17].mxu0 }
 0x159   : > { %v1513_v51 = vadd.f32 %v1512_v48, %v1511_v44  ;;  %v1548_v52 = vpop.f32.mrb[17].mxu1  ;;  %v1514_v53 = vpop.f32.mrb[18].mxu0 }
 0x15a   : > { %1245 = vst [vmem:[%s2138_s9 + $0x50] sm:$0xff] %v1229_v45  ;;  %v1230_v55 = vmax.f32 %v1214_v46, 0.0  ;;  %v1549_v56 = vadd.f32 %v1548_v52, %v1547_v47  ;;  %v1550_v57 = vpop.f32.mrb[18].mxu1  ;;  %v1515_v58 = vpop.f32.mrb[19].mxu0 }
 0x15b   : > { %v1180_v60 = vadd.f32 %v1513_v51, %v797_v49  ;;  %v1516_v61 = vadd.f32 %v1515_v58, %v1514_v53  ;;  %v1551_v62 = vpop.f32.mrb[19].mxu1 }
 0x15c   : > { %1246 = vst [vmem:[%s2138_s9 + $0x58] sm:$0xff] %v1230_v55  ;;  %v1192_v34 = vadd.f32 %v1549_v56, %v845_v54  ;;  %v1552_v0 = vadd.f32 %v1551_v62, %v1550_v57 }
 0x15d   : > { %v1203_v1 = vadd.f32 %v2128_v50, %v1180_v60  ;;  %v1181_v2 = vadd.f32 %v1516_v61, %v800_v59 }
 0x15e   : > { %v1215_v3 = vadd.f32 %v2128_v50, %v1192_v34  ;;  %v1193_v4 = vadd.f32 %v1552_v0, %v848_v63 }
 0x15f   : > { %v1219_v5 = vmax.f32 %v1203_v1, 0.0  ;;  %v1204_v6 = vadd.f32 %v2128_v50, %v1181_v2  ;;  %v1517_v39 = vpop.f32.mrb[20].mxu0 }
 0x160   : > { %v1231_v7 = vmax.f32 %v1215_v3, 0.0  ;;  %v1216_v8 = vadd.f32 %v2128_v50, %v1193_v4  ;;  %v1553_v9 = vpop.f32.mrb[20].mxu1  ;;  %v1518_v10 = vpop.f32.mrb[21].mxu0 }
 0x161   : > { %1235 = vst [vmem:[%s2138_s9] sm:$0xff] %v1219_v5  ;;  %v1220_v12 = vmax.f32 %v1204_v6, 0.0  ;;  %v1519_v13 = vadd.f32 %v1518_v10, %v1517_v39  ;;  %v1554_v14 = vpop.f32.mrb[21].mxu1  ;;  %v1520_v15 = vpop.f32.mrb[22].mxu0 }
 0x162   : > { %1247 = vst [vmem:[%s2138_s9 + $0x60] sm:$0xff] %v1231_v7  ;;  %v1232_v17 = vmax.f32 %v1216_v8, 0.0  ;;  %v1555_v18 = vadd.f32 %v1554_v14, %v1553_v9  ;;  %v1556_v19 = vpop.f32.mrb[22].mxu1  ;;  %v1521_v20 = vpop.f32.mrb[23].mxu0 }
 0x163   : > { %1236 = vst [vmem:[%s2138_s9 + $0x8] sm:$0xff] %v1220_v12  ;;  %v1182_v32 = vadd.f32 %v1519_v13, %v805_v11  ;;  %v1522_v23 = vadd.f32 %v1521_v20, %v1520_v15  ;;  %v1557_v24 = vpop.f32.mrb[23].mxu1 }
 0x164   : > { %1248 = vst [vmem:[%s2138_s9 + $0x68] sm:$0xff] %v1232_v17  ;;  %v1194_v21 = vadd.f32 %v1555_v18, %v853_v16  ;;  %v1558_v26 = vadd.f32 %v1557_v24, %v1556_v19 }
 0x165   : > { %v1205_v28 = vadd.f32 %v2128_v50, %v1182_v32  ;;  %v1183_v29 = vadd.f32 %v1522_v23, %v808_v22 }
 0x166   : > { %v1217_v36 = vadd.f32 %v2128_v50, %v1194_v21  ;;  %v1195_v30 = vadd.f32 %v1558_v26, %v856_v25 }
 0x167   : > { %v1221_v31 = vmax.f32 %v1205_v28, 0.0  ;;  %v1206_v33 = vadd.f32 %v2128_v50, %v1183_v29 }
 0x168   : > { %v1233_v42 = vmax.f32 %v1217_v36, 0.0  ;;  %v1218_v27 = vadd.f32 %v2128_v50, %v1195_v30 }
 0x169   : > { %1237 = vst [vmem:[%s2138_s9 + $0x10] sm:$0xff] %v1221_v31  ;;  %v1222_v35 = vmax.f32 %v1206_v33, 0.0 }
 0x16a   : > { %1249 = vst [vmem:[%s2138_s9 + $0x70] sm:$0xff] %v1233_v42  ;;  %v1234_v37 = vmax.f32 %v1218_v27, 0.0 }
 0x16b   : > { %1238 = vst [vmem:[%s2138_s9 + $0x18] sm:$0xff] %v1222_v35 }
 0x16c   : > { %1250 = vst [vmem:[%s2138_s9 + $0x78] sm:$0xff] %v1234_v37 }
 0x16d   : > { %1734 = shalt.err (!%p1731_p8)
}
 0x16e   : > { %s1735_s27 = scalar_lea.hbm %s2188_s15, 2048  ;;  %s1739_s9 = scalar_lea.hbm %s2248_s6, 8192 }
 0x16f   : > { %p1736_p10 = scmp.ne.s32.totalorder %s2188_s15, %s1735_s27  ;;  %p1740_p13 = scmp.lt.u32.totalorder %s2188_s15, %s2248_s6 }
 0x170   : > { %p1741_p0 = scmp.lt.u32.totalorder %s1739_s9, %s1735_s27  ;;  %p1743_p2 = scmp.lt.u32.totalorder %s1735_s27, %s2188_s15 }
 0x171   : > { %p1737_p11 = pnand %p1736_p10, %p1883_p5 }
 0x172   : > { %p1742_p1 = por %p1741_p0, %p1740_p13 }
 0x173   : > { %p1738_p12 = pneg %p1737_p11 }
 0x174   : > { %p1744_p3 = por %p1743_p2, %p1742_p1 }
 0x176   : > { %p1745_p4 = pnand %p1744_p3, %p1738_p12 }
 0x178   : > { %1748 = shalt.err (!%p1745_p4)
}
 0x179   : > { %s1802_s14 = smov 128   ;;  %s1803_s17 = smov 512  }
 0x17a   : > { %s1804_s18 = smov 8  }
 0x17b   : > { %1607 = dma.vmem_to_hbm [thread:$0]  (%p1883_p5), %s2191_s7, 2048, %s2188_s15, %s1252_s24, %s1802_s14, %s1803_s17, %s1804_s18  }
 0x17c PF: > { %p1613_p6 = scmp.ge.s32.totalorder %s1799_s26, 2  ;;  %s1282_s19 = sand.u32 1, %s1779_s21  }
 0x17d   : > { %s1283_s20 = scalar_lea.sflag [#allocation5], %s1282_s19 }
 0x17e   : > { %p1610_p7 = pnand %p1613_p6, %p1894_p9 }
 0x180   : > { %1774 = dma.done.wait (!%p1610_p7), %s1283_s20, 2048  }
 0x181   : > { %1776 = vsyncadd (!%p1610_p7), %s1283_s20, 4294965248  ;;  %s19_s26 = sadd.s32 1, %s1799_s26   ;;  %s2252_s21 = smov %s1783_s22 }
 0x182   : > { %p16_p8 = scmp.ge.s32.totalorder %s19_s26, 6   ;;  %s2253_s22 = smov %s1787_s23 }
 0x183   : > { %s2254_s23 = smov %s1892_s10  ;;  %s2255_s24 = smov %s1795_s25 }
 0x184   : > { %s2256_s25 = smov %s2258_s29  ;;  %18 = sbr.rel (!%p16_p8) target bundleno = 4 (0x4), region = 186 }
 0x18b   :  { %1288 = vsyncpa [#allocation5], 1 }
 0x18c   :  { %1290 = vsyncpa [#allocation5 + $0x1], 1 }

// kernel: bottleneck_forward.4
= control target key start
LH: loop header
LB: loop body
LE: loop exit
PB: predicated region body
PF: predicated region fallthrough
CT: control target
= control target key end

     0   :  { %s3253_s12 = smov 0   ;;  %s3889_s0 = inlined_call_operand.vmem [shape: bf16[808,128], index: 0, kind: input, shape index: {}]   ;;  %s3890_s1 = inlined_call_operand.vmem [shape: bf16[9,128,128], index: 1, kind: input, shape index: {}]   ;;  %s3891_s2 = inlined_call_operand.vmem [shape: f32[1,128], index: 2, kind: input, shape index: {}]   ;;  %s3892_s3 = inlined_call_operand.vmem [shape: bf16[768,128], index: 3, kind: output, shape index: {}]  }
   0x1 LB: > { %s2251_s13 = sadd.s32 4294967295, %s3231_s12   ;;  %p2254_p0 = scmp.ge.s32.totalorder %s3231_s12, 1  ;;  %s3231_s12 = sphi %s3253_s12, %s13_s12  }
   0x2   : > { %p127_p1 = scmp.lt.s32.totalorder %s3231_s12, 7 }
   0x4   : > { %p128_p2 = pnand %p2254_p0, %p127_p1 }
   0x5   : > { %v3138_v0 = vld [vmem:[%s3890_s1 + $0x40] sm:$0xff] (!%p128_p2)   ;;  %v3140_v2 = vld [vmem:[%s3890_s1 + $0x48] sm:$0xff] (!%p128_p2)   ;;  %v3142_v4 = vld [vmem:[%s3890_s1 + $0x50] sm:$0xff] (!%p128_p2)   ;;  %s2257_s26 = sshll.u32 (!%p128_p2), %s2251_s13, 7  ;;  %vm255_vm0 = vsmask.f32 (!%p128_p2), 7424 }
   0x6   : > { %131 = sbr.rel (%p128_p2) target bundleno = 399 (0x18f), region = 32  ;;  %v3139_v1 = vld [vmem:[%s3890_s1 + $0x100] sm:$0xff] (!%p128_p2)   ;;  %2698 = vmatprep.subr.bf16.mxu1 (!%p128_p2), %v3138_v0  ;;  %v3141_v3 = vld [vmem:[%s3890_s1 + $0x108] sm:$0xff] (!%p128_p2)   ;;  %v3143_v5 = vld [vmem:[%s3890_s1 + $0x110] sm:$0xff] (!%p128_p2)   ;;  %s154_s29 = sshra.s32 (!%p128_p2), %s2257_s26, 3  ;;  %vm647_vm2 = vcmask (!%p128_p2), 1046528  }
   0x7   : > { %2826 = vmatprep.subr.bf16.mxu0 (!%p128_p2), %v3139_v1  ;;  %2699 = vmatpush3.bf16.msra.mxu1 (!%p128_p2), %v3138_v0  ;;  %v3144_v6 = vld [vmem:[%s3890_s1 + $0x58] sm:$0xff] (!%p128_p2)   ;;  %s2258_s5 = sshll.u32 (!%p128_p2), %s154_s29, 2  ;;  %v3146_v8 = vld [vmem:[%s3890_s1 + $0x60] sm:$0xff] (!%p128_p2)   ;;  %v3148_v10 = vld [vmem:[%s3890_s1 + $0x68] sm:$0xff] (!%p128_p2)   ;;  %vm1041_vm1 = vsmask.f32 (!%p128_p2), 6400 }
   0x8   : > { %2827 = vmatpush3.bf16.msra.mxu0 (!%p128_p2), %v3139_v1  ;;  %2700 = vmatprep.subr.bf16.mxu1 (!%p128_p2), %v3140_v2  ;;  %v3145_v7 = vld [vmem:[%s3890_s1 + $0x118] sm:$0xff] (!%p128_p2)   ;;  %v3147_v9 = vld [vmem:[%s3890_s1 + $0x120] sm:$0xff] (!%p128_p2)   ;;  %s3299_s16 = scalar_lea.vmem (!%p128_p2), %s3889_s0, %s2258_s5  ;;  %v3149_v11 = vld [vmem:[%s3890_s1 + $0x128] sm:$0xff] (!%p128_p2)   ;;  %vm1273_vm3 = vcmask (!%p128_p2), 1045504   ;;  %vm1667_vm4 = vsmask.f32 (!%p128_p2), 5376 }
   0x9   : > { %2828 = vmatprep.subr.bf16.mxu0 (!%p128_p2), %v3141_v3  ;;  %v3305_v12 = vld [vmem:[%s3299_s16] sm:$0xff] (!%p128_p2)   ;;  %v3308_v13 = vld [vmem:[%s3299_s16 + $0x8] sm:$0xff] (!%p128_p2)   ;;  %v3150_v14 = vld [vmem:[%s3890_s1 + $0x70] sm:$0xff] (!%p128_p2)   ;;  %vm1899_vm5 = vcmask (!%p128_p2), 1044480  }
   0xa   : > { %v3314_v15 = vld [vmem:[%s3299_s16 + $0x10] sm:$0xff] (!%p128_p2)   ;;  %v257_v16 = vshrl.u32 (!%p128_p2), %v3305_v12, 16  ;;  %v259_v17 = vshll.u32 (!%p128_p2), %v3305_v12, 16  ;;  %v264_v18 = vshll.u32 (!%p128_p2), %v3308_v13, 16  ;;  %v268_v19 = vshrl.u32 (!%p128_p2), %v3308_v13, 16  ;;  %v3330_v27 = vld [vmem:[%s3299_s16 + $0x18] sm:$0xff] (!%p128_p2)  }
   0xb   : > { %2701 = vmatpush3.bf16.msra.mxu1 (!%p128_p2), %v3140_v2  ;;  %v3321_v20 = vshll.u32 (!%p128_p2), %v3314_v15, 16  ;;  %v3324_v21 = vshrl.u32 (!%p128_p2), %v3314_v15, 16  ;;  %v3151_v22 = vld [vmem:[%s3890_s1 + $0x130] sm:$0xff] (!%p128_p2)   ;;  %v3152_v30 = vld [vmem:[%s3890_s1 + $0x78] sm:$0xff] (!%p128_p2)   ;;  %v3338_v33 = vshll.u32 (!%p128_p2), %v3330_v27, 16  ;;  %v3344_v36 = vshrl.u32 (!%p128_p2), %v3330_v27, 16 }
   0xc   : > { %2829 = vmatpush3.bf16.msra.mxu0 (!%p128_p2), %v3141_v3  ;;  %2702 = vmatprep.subr.bf16.mxu1 (!%p128_p2), %v3142_v4  ;;  %v261_v23 = vrot.slane (!%p128_p2), %v259_v17, 1  ;;  %v266_v24 = vrot.slane (!%p128_p2), %v264_v18, 1  ;;  %v1042_v25 = vrot.slane (!%p128_p2), %v268_v19, 1  ;;  %v1043_v26 = vrot.slane (!%p128_p2), %v264_v18, 2  ;;  %v3153_v34 = vld [vmem:[%s3890_s1 + $0x138] sm:$0xff] (!%p128_p2)   ;;  %v3157_v41 = vld [vmem:[%s3890_s1] sm:$0xff] (!%p128_p2)  }
   0xd   : > { %2830 = vmatprep.subr.bf16.mxu0 %v3143_v5  ;;  %v1045_v28 = vrot.slane %v3324_v21, 1  ;;  %v1046_v29 = vrot.slane %v3321_v20, 2  ;;  %v274_v38 = vrot.slane %v3321_v20, 1  ;;  %v1050_v39 = vrot.slane %v3338_v33, 2  ;;  %v3355_v43 = vld [vmem:[%s3299_s16 + $0x20] sm:$0xff]   ;;  %v3367_v49 = vld [vmem:[%s3299_s16 + $0x28] sm:$0xff]  }
   0xe   : > { %v262_v31 = vor.u32 %v261_v23, %v257_v16  ;;  %v1044_v32 = vor.u32 %v1043_v26, %v1042_v25  ;;  %v1049_v42 = vrot.slane %v3344_v36, 1  ;;  %v270_v44 = vor.u32 %v268_v19, %v266_v24  ;;  %v3159_v46 = vld [vmem:[%s3890_s1 + $0x140] sm:$0xff]   ;;  %v3160_v55 = vld [vmem:[%s3890_s1 + $0x8] sm:$0xff]   ;;  %v3390_v63 = vld [vmem:[%s3299_s16 + $0x30] sm:$0xff]  }
   0xf   : > { %2703 = vmatpush3.bf16.msra.mxu1 %v3142_v4  ;;  %v1047_v35 = vor.u32 %v1046_v29, %v1045_v28  ;;  %v3361_v47 = vshll.u32 %v3355_v43, 16  ;;  %v3364_v48 = vshrl.u32 %v3355_v43, 16  ;;  %v278_v50 = vor.u32 %v3324_v21, %v274_v38  ;;  %v3161_v60 = vld [vmem:[%s3890_s1 + $0x148] sm:$0xff]   ;;  %v3163_v2 = vld [vmem:[%s3890_s1 + $0x10] sm:$0xff]   ;;  %v174_v23 = vld [vmem:[%s3299_s16 + $0x40] sm:$0xf] }
  0x10   : > { %2831 = vmatpush3.bf16.msra.mxu0 %v3143_v5  ;;  %2704 = vmatprep.subr.bf16.mxu1 %v3144_v6  ;;  %v267_v37 = vsel %vm255_vm0, %v262_v31, %v266_v24  ;;  %v1051_v45 = vor.u32 %v1050_v39, %v1049_v42  ;;  %v282_v51 = vrot.slane %v3338_v33, 1  ;;  %v275_v54 = vsel %vm255_vm0, %v270_v44, %v274_v38  ;;  %v3166_v25 = vld [vmem:[%s3890_s1 + $0x18] sm:$0xff]   ;;  %v3169_v44 = vld [vmem:[%s3890_s1 + $0x20] sm:$0xff]  }
  0x11   : > { %2832 = vmatprep.subr.bf16.mxu0 %v3145_v7  ;;  %2714 = vmatprep.mubr.bf16.mxu1 %v267_v37  ;;  %v1048_v40 = vsel %vm1041_vm1, %v1044_v32, %v1047_v35  ;;  %v1053_v52 = vrot.slane %v3364_v48, 1  ;;  %v1054_v53 = vrot.slane %v3361_v47, 2  ;;  %v3378_v56 = vshll.u32 %v3367_v49, 16  ;;  %v3167_v26 = vld [vmem:[%s3890_s1 + $0x158] sm:$0xff]   ;;  %v3436_v32 = vld [vmem:[%s3299_s16 + $0x48] sm:$0xf] }
  0x12   : > { %2842 = vmatprep.mubr.bf16.mxu0 %v1048_v40  ;;  %v3381_v57 = vshrl.u32 %v3367_v49, 16  ;;  %v1052_v58 = vsel %vm1041_vm1, %v1047_v35, %v1051_v45  ;;  %v283_v0 = vsel %vm255_vm0, %v278_v50, %v282_v51  ;;  %v290_v1 = vrot.slane %v3361_v47, 1 }
  0x13   : > { %2705 = vmatpush3.bf16.msra.mxu1 %v3144_v6  ;;  %v1055_v59 = vor.u32 %v1054_v53, %v1053_v52  ;;  %v1058_v62 = vrot.slane %v3378_v56, 2  ;;  %v286_v4 = vor.u32 %v3344_v36, %v282_v51  ;;  %v3400_v5 = vshll.u32 %v3390_v63, 16 }
  0x14   : > { %2833 = vmatpush3.bf16.msra.mxu0 %v3145_v7  ;;  %2706 = vmatprep.subr.bf16.mxu1 %v3146_v8  ;;  %v1057_v61 = vrot.slane %v3381_v57, 1  ;;  %v3403_v6 = vshrl.u32 %v3390_v63, 16  ;;  %v298_v16 = vrot.slane %v3378_v56, 1  ;;  %v3441_v38 = vcombine.low %v174_v23, %v174_v23 }
  0x15   : > { %2834 = vmatprep.subr.bf16.mxu0 %v3147_v9  ;;  %v1056_v3 = vsel %vm1041_vm1, %v1051_v45, %v1055_v59  ;;  %v291_v19 = vsel %vm255_vm0, %v286_v4, %v290_v1  ;;  %v306_v37 = vrot.slane %v3400_v5, 1  ;;  %v3448_v42 = vcombine.low %v3436_v32, %v3436_v32 }
  0x16   : > { %v1059_v7 = vor.u32 %v1058_v62, %v1057_v61  ;;  %v302_v35 = vor.u32 %v3381_v57, %v298_v16  ;;  %v320_v61 = vshll.u32 %v3441_v38, 16 }
  0x17   : > { %2707 = vmatpush3.bf16.msra.mxu1 %v3146_v8  ;;  %v3406_v8 = vld [vmem:[%s3299_s16 + $0x38] sm:$0xff]   ;;  %v1079_v52 = vshrl.u32 %v3448_v42, 16  ;;  %v1082_v53 = vshll.u32 %v3448_v42, 16 }
  0x18   : > { %2835 = vmatpush3.bf16.msra.mxu0 %v3147_v9  ;;  %2708 = vmatprep.subr.bf16.mxu1 %v3148_v10  ;;  %v3165_v9 = vld [vmem:[%s3890_s1 + $0x150] sm:$0xff]   ;;  %v3416_v17 = vshll.u32 %v3406_v8, 16  ;;  %v3419_v18 = vshrl.u32 %v3406_v8, 16  ;;  %v1060_v24 = vsel %vm1041_vm1, %v1055_v59, %v1059_v7  ;;  %v3172_v59 = vld [vmem:[%s3890_s1 + $0x28] sm:$0xff]  }
  0x19   : > { %2836 = vmatprep.subr.bf16.mxu0 %v3149_v11 }
  0x1a   : > { %v1065_v28 = vrot.slane %v3419_v18, 1  ;;  %v1066_v29 = vrot.slane %v3416_v17, 2 }
  0x1b   : > { %2709 = vmatpush3.bf16.msra.mxu1 %v3148_v10  ;;  %v1061_v10 = vrot.slane %v3403_v6, 1 }
  0x1c   : > { %2837 = vmatpush3.bf16.msra.mxu0 %v3149_v11  ;;  %2710 = vmatprep.subr.bf16.mxu1 %v3150_v14  ;;  %v1062_v11 = vrot.slane %v3400_v5, 2  ;;  %v1067_v45 = vor.u32 %v1066_v29, %v1065_v28  ;;  %v3180_v28 = vld [vmem:[%s3890_s1 + $0x178] sm:$0xff]  }
  0x1d   : > { %2838 = vmatprep.subr.bf16.mxu0 %v3151_v22 }
  0x1f   : > { %2711 = vmatpush3.bf16.msra.mxu1 %v3150_v14  ;;  %v294_v14 = vor.u32 %v3364_v48, %v290_v1  ;;  %v1084_v1 = vrot.slane %v1082_v53, 2 }
  0x20   : > { %2839 = vmatpush3.bf16.msra.mxu0 %v3151_v22  ;;  %2712 = vmatprep.subr.bf16.mxu1 %v3152_v30  ;;  %v1063_v22 = vor.u32 %v1062_v11, %v1061_v10  ;;  %v3176_v10 = vld [vmem:[%s3890_s1 + $0x30] sm:$0xff]  }
  0x21   : > { %2840 = vmatprep.subr.bf16.mxu0 %v3153_v34 }
  0x22   : > { %v1064_v39 = vsel %vm1041_vm1, %v1059_v7, %v1063_v22  ;;  %v1068_v62 = vsel %vm1041_vm1, %v1063_v22, %v1067_v45 }
  0x23   : > { %2713 = vmatpush3.bf16.msra.mxu1 %v3152_v30  ;;  %v175_v30 = vld [vmem:[%s3299_s16 + $0x44] sm:$0xf] }
  0x24   : > { %2841 = vmatpush3.bf16.msra.mxu0 %v3153_v34  ;;  %2730 = vmatprep.subr.bf16.mxu1 %v3157_v41  ;;  %v3433_v31 = vcombine.low %v174_v23, %v175_v30  ;;  %v299_v34 = vsel %vm255_vm0, %v294_v14, %v298_v16  ;;  %v3178_v14 = vld [vmem:[%s3890_s1 + $0x170] sm:$0xff]   ;;  %v1274_v16 = vrot.slane %v3308_v13, 2  ;;  %v1275_v23 = vrot.slane %v3314_v15, 2  ;;  %v3181_v30 = vld [vmem:[%s3890_s1 + $0x80] sm:$0xff]  }
  0x25   : > { %2858 = vmatprep.subr.bf16.mxu0 %v3159_v46 }
  0x26   : > { %2715 = vmatmul.mubr.bf16.vlgmr.msra.gmra.mrb[0].mxu1 %v275_v54  ;;  %v1070_v40 = vshrl.u32 %v3433_v31, 16  ;;  %v310_v54 = vor.u32 %v3403_v6, %v306_v37 }
  0x27   : > { %2843 = vmatmul.mubr.bf16.vlgmr.msra.gmra.mrb[0].mxu0 %v1052_v58  ;;  %2731 = vmatpush3.bf16.msra.mxu1 %v3157_v41  ;;  %v1073_v41 = vshll.u32 %v3433_v31, 16  ;;  %v307_v58 = vsel %vm255_vm0, %v302_v35, %v306_v37  ;;  %v655_v35 = vrot.slane %v3355_v43, 1  ;;  %v657_v37 = vrot.slane %v3367_v49, 1 }
  0x28   : > { %2859 = vmatpush3.bf16.msra.mxu0 %v3159_v46  ;;  %2732 = vmatprep.subr.bf16.mxu1 %v3160_v55  ;;  %v3171_v46 = vld [vmem:[%s3890_s1 + $0x160] sm:$0xff]   ;;  %v1072_v50 = vrot.slane %v1070_v40, 1 }
  0x29   : > { %2860 = vmatprep.subr.bf16.mxu0 %v3161_v60  ;;  %2718 = vmatprep.mubr.bf16.mxu1 %v283_v0  ;;  %v1075_v51 = vrot.slane %v1073_v41, 2  ;;  %v1081_v0 = vrot.slane %v1079_v52, 1  ;;  %v663_v52 = vrot.slane %v3441_v38, 1 }
  0x2a   : > { %2846 = vmatprep.mubr.bf16.mxu0 %v1056_v3 }
  0x2b   : > { %2733 = vmatpush3.bf16.msra.mxu1 %v3160_v55  ;;  %v314_v55 = vrot.slane %v3416_v17, 1  ;;  %v1085_v11 = vor.u32 %v1084_v1, %v1081_v0  ;;  %v1675_v1 = vrot.slane %v3364_v48, 2 }
  0x2c   : > { %2861 = vmatpush3.bf16.msra.mxu0 %v3161_v60  ;;  %2734 = vmatprep.subr.bf16.mxu1 %v3163_v2  ;;  %v1076_v60 = vor.u32 %v1075_v51, %v1072_v50  ;;  %v3517_v50 = vrot.slane %v3406_v8, 1 }
  0x2d   : > { %2862 = vmatprep.subr.bf16.mxu0 %v3165_v9  ;;  %v315_v3 = vsel %vm255_vm0, %v310_v54, %v314_v55  ;;  %v318_v7 = vor.u32 %v3419_v18, %v314_v55  ;;  %v1668_v54 = vrot.slane %v3324_v21, 2  ;;  %v3184_v21 = vld [vmem:[%s3890_s1 + $0x188] sm:$0xff]  }
  0x2e   : > { %2719 = vmatmul.mubr.bf16.gmra.mrb[4].mxu1 %v291_v19  ;;  %v1077_v4 = vsel %vm1041_vm1, %v1067_v45, %v1076_v60  ;;  %v648_v19 = vrot.slane %v3305_v12, 1  ;;  %v3182_v45 = vld [vmem:[%s3890_s1 + $0x180] sm:$0xff]   ;;  %v3537_v38 = vsel %vm647_vm2, %v3517_v50, %v663_v52 }
  0x2f   : > { %2847 = vmatmul.mubr.bf16.gmra.mrb[4].mxu0 %v1060_v24  ;;  %2735 = vmatpush3.bf16.msra.mxu1 %v3163_v2  ;;  %v3173_v2 = vld [vmem:[%s3890_s1 + $0x168] sm:$0xff]   ;;  %v649_v24 = vrot.slane %v3308_v13, 1 }
  0x30   : > { %2863 = vmatpush3.bf16.msra.mxu0 %v3165_v9  ;;  %2736 = vmatprep.subr.bf16.mxu1 %v3166_v25  ;;  %v322_v9 = vrot.slane %v320_v61, 1 }
  0x31   : > { %2864 = vmatprep.subr.bf16.mxu0 %v3167_v26  ;;  %2722 = vmatprep.mubr.bf16.mxu1 %v299_v34  ;;  %v3497_v29 = vsel %vm647_vm2, %v648_v19, %v649_v24  ;;  %v1276_v34 = vsel %vm1273_vm3, %v1274_v16, %v1275_v23 }
  0x32   : > { %2850 = vmatprep.mubr.bf16.mxu0 %v1064_v39  ;;  %v323_v22 = vsel %vm255_vm0, %v318_v7, %v322_v9  ;;  %v1277_v39 = vrot.slane %v3330_v27, 2  ;;  %v1680_v7 = vrot.slane %v3378_v56, 3  ;;  %v1283_v9 = vrot.slane %v3390_v63, 2  ;;  %v3188_v56 = vld [vmem:[%s3890_s1 + $0x198] sm:$0xff]  }
  0x33   : > { %2737 = vmatpush3.bf16.msra.mxu1 %v3166_v25  ;;  %v1086_v25 = vsel %vm1041_vm1, %v1076_v60, %v1085_v11  ;;  %v1671_v60 = vrot.slane %v3344_v36, 2  ;;  %v3185_v36 = vld [vmem:[%s3890_s1 + $0x90] sm:$0xff]   ;;  %v3187_v11 = vld [vmem:[%s3890_s1 + $0x98] sm:$0xff]  }
  0x34   : > { %2865 = vmatpush3.bf16.msra.mxu0 %v3167_v26  ;;  %2738 = vmatprep.subr.bf16.mxu1 %v3169_v44  ;;  %v3179_v26 = vld [vmem:[%s3890_s1 + $0x38] sm:$0xff]   ;;  %v3530_v55 = vsel %vm1273_vm3, %v1275_v23, %v1277_v39  ;;  %v1688_v23 = vrot.slane %v3416_v17, 3 }
  0x35   : > { %2866 = vmatprep.subr.bf16.mxu0 %v3171_v46 }
  0x36   : > { %2723 = vmatmul.mubr.bf16.gmra.mrb[8].mxu1 %v307_v58  ;;  %v3183_v58 = vld [vmem:[%s3890_s1 + $0x88] sm:$0xff]  }
  0x37   : > { %2851 = vmatmul.mubr.bf16.gmra.mrb[8].mxu0 %v1068_v62  ;;  %2739 = vmatpush3.bf16.msra.mxu1 %v3169_v44  ;;  %v659_v44 = vrot.slane %v3390_v63, 1  ;;  %v1672_v62 = vrot.slane %v3338_v33, 3  ;;  %v3186_v33 = vld [vmem:[%s3890_s1 + $0x190] sm:$0xff]  }
  0x38   : > { %2867 = vmatpush3.bf16.msra.mxu0 %v3171_v46  ;;  %2740 = vmatprep.subr.bf16.mxu1 %v3172_v59  ;;  %v3514_v46 = vsel %vm647_vm2, %v655_v35, %v657_v37 }
  0x39   : > { %2868 = vmatprep.subr.bf16.mxu0 %v3173_v2  ;;  %2726 = vmatprep.mubr.bf16.mxu1 %v315_v3  ;;  %v3520_v51 = vsel %vm647_vm2, %v657_v37, %v659_v44  ;;  %v3526_v53 = vsel %vm647_vm2, %v659_v44, %v3517_v50  ;;  %v1676_v3 = vrot.slane %v3361_v47, 3  ;;  %v3603_v37 = vrot.slane %v3433_v31, 2 }
  0x3a   : > { %2854 = vmatprep.mubr.bf16.mxu0 %v1077_v4  ;;  %v1679_v4 = vrot.slane %v3381_v57, 2 }
  0x3b   : > { %2741 = vmatpush3.bf16.msra.mxu1 %v3172_v59  ;;  %v1669_v59 = vrot.slane %v3321_v20, 3  ;;  %v1281_v20 = vrot.slane %v3367_v49, 2  ;;  %v1677_v48 = vor.u32 %v1676_v3, %v1675_v1 }
  0x3c   : > { %2869 = vmatpush3.bf16.msra.mxu0 %v3173_v2  ;;  %2742 = vmatprep.subr.bf16.mxu1 %v3176_v10  ;;  %v1673_v2 = vor.u32 %v1672_v62, %v1671_v60  ;;  %v1681_v57 = vor.u32 %v1680_v7, %v1679_v4  ;;  %v3196_v7 = vld [vmem:[%s3890_s1 + $0x1b8] sm:$0xff]  }
  0x3d   : > { %2870 = vmatprep.subr.bf16.mxu0 %v3178_v14  ;;  %v1670_v61 = vor.u32 %v1669_v59, %v1668_v54  ;;  %v3579_v19 = vsel %vm1273_vm3, %v1281_v20, %v1283_v9  ;;  %v857_v54 = vrot.slane %v3433_v31, 1 }
  0x3e   : > { %2727 = vmatmul.mubr.bf16.gmra.mrb[12].mxu1 %v323_v22  ;;  %v1285_v22 = vrot.slane %v3406_v8, 2  ;;  %v3615_v44 = vsel %vm1667_vm4, %v1677_v48, %v1681_v57 }
  0x3f   : > { %2855 = vmatmul.mubr.bf16.gmra.mrb[12].mxu0 %v1086_v25  ;;  %2743 = vmatpush3.bf16.msra.mxu1 %v3176_v10  ;;  %v1683_v10 = vrot.slane %v3403_v6, 2  ;;  %v1687_v6 = vrot.slane %v3419_v18, 2  ;;  %v177_v18 = vld [vmem:[%s3299_s16 + $0x4c] sm:$0xf]  ;;  %v3190_v25 = vld [vmem:[%s3890_s1 + $0x1a0] sm:$0xff]  }
  0x40   : > { %2871 = vmatpush3.bf16.msra.mxu0 %v3178_v14  ;;  %2744 = vmatprep.subr.bf16.mxu1 %v3179_v26  ;;  %v1684_v14 = vrot.slane %v3400_v5, 3  ;;  %v3189_v5 = vld [vmem:[%s3890_s1 + $0xa0] sm:$0xff]   ;;  %v3597_v17 = vsel %vm1273_vm3, %v1283_v9, %v1285_v22 }
  0x41   : > { %2872 = vmatprep.subr.bf16.mxu0 %v3180_v28  ;;  %2746 = vmatprep.mubr.bf16.mxu1 %v3305_v12  ;;  %v1279_v12 = vrot.slane %v3355_v43, 2 }
  0x42   : > { %2874 = vmatprep.mubr.bf16.mxu0 %v1276_v34  ;;  %v1685_v16 = vor.u32 %v1684_v14, %v1683_v10  ;;  %v3191_v34 = vld [vmem:[%s3890_s1 + $0xa8] sm:$0xff]   ;;  %v1909_v10 = vrot.slane %v3406_v8, 3  ;;  %v1905_v14 = vrot.slane %v3367_v49, 3 }
  0x43   : > { %2745 = vmatpush3.bf16.msra.mxu1 %v3179_v26  ;;  %v3548_v0 = vsel %vm1273_vm3, %v1277_v39, %v1279_v12  ;;  %v3566_v47 = vsel %vm1273_vm3, %v1279_v12, %v1281_v20  ;;  %v1689_v26 = vor.u32 %v1688_v23, %v1687_v6  ;;  %v3606_v39 = vcombine.low %v3436_v32, %v177_v18  ;;  %v3193_v20 = vld [vmem:[%s3890_s1 + $0xb0] sm:$0xff]   ;;  %v3200_v18 = vld [vmem:[%s3890_s1 + $0x1c8] sm:$0xff]  }
  0x44   : > { %2873 = vmatpush3.bf16.msra.mxu0 %v3180_v28  ;;  %2762 = vmatprep.subr.bf16.mxu1 %v3181_v30  ;;  %v1691_v28 = vrot.slane %v1070_v40, 2  ;;  %v3609_v40 = vsel %vm1667_vm4, %v1670_v61, %v1673_v2  ;;  %v3621_v32 = vsel %vm1667_vm4, %v1681_v57, %v1685_v16  ;;  %v3640_v61 = vsel %vm647_vm2, %v3517_v50, %v857_v54 }
  0x45   : > { %2890 = vmatprep.subr.bf16.mxu0 %v3182_v45  ;;  %v3624_v52 = vsel %vm1667_vm4, %v1685_v16, %v1689_v26  ;;  %v1696_v59 = vshrl.u32 %v3606_v39, 16  ;;  %v1699_v62 = vshll.u32 %v3606_v39, 16  ;;  %v859_v50 = vrot.slane %v3448_v42, 1 }
  0x46   : > { %2747 = vmatmul.mubr.bf16.vlgmr.msra.gmra.mrb[0].mxu1 %v3308_v13  ;;  %v1911_v57 = vrot.slane %v3433_v31, 3  ;;  %v3198_v31 = vld [vmem:[%s3890_s1 + $0x1c0] sm:$0xff]   ;;  %v3201_v13 = vld [vmem:[%s3890_s1 + $0xd0] sm:$0xff]  }
  0x47   : > { %2875 = vmatmul.mubr.bf16.vlgmr.msra.gmra.mrb[0].mxu0 %v3530_v55  ;;  %2763 = vmatpush3.bf16.msra.mxu1 %v3181_v30  ;;  %v1692_v30 = vrot.slane %v1073_v41, 3  ;;  %v3612_v41 = vsel %vm1667_vm4, %v1673_v2, %v1677_v48  ;;  %v1698_v1 = vrot.slane %v1696_v59, 2  ;;  %v1701_v2 = vrot.slane %v1699_v62, 3  ;;  %v3195_v48 = vld [vmem:[%s3890_s1 + $0xb8] sm:$0xff]   ;;  %v3215_v59 = vld [vmem:[%s3890_s1 + $0x200] sm:$0xff]  }
  0x48   : > { %2891 = vmatpush3.bf16.msra.mxu0 %v3182_v45  ;;  %2764 = vmatprep.subr.bf16.mxu1 %v3183_v58  ;;  %v3192_v45 = vld [vmem:[%s3890_s1 + $0x1a8] sm:$0xff]   ;;  %v3684_v16 = vsel %vm1899_vm5, %v1909_v10, %v1911_v57 }
  0x49   : > { %2892 = vmatprep.subr.bf16.mxu0 %v3184_v21  ;;  %2750 = vmatprep.mubr.bf16.mxu1 %v3314_v15  ;;  %v1693_v12 = vor.u32 %v1692_v30, %v1691_v28  ;;  %v3652_v3 = vor.u32 %v1701_v2, %v1698_v1  ;;  %v3755_v28 = vld [vmem:[%s3299_s16 + $0x50] ss:$0 sps:$4 sm:$0xff]   ;;  %v3208_v30 = vld [vmem:[%s3890_s1 + $0x1e8] sm:$0xff]   ;;  %v3224_v2 = vld [vmem:[%s3299_s16 + $0x18] sm:$0xff]  }
  0x4a   : > { %2878 = vmatprep.mubr.bf16.mxu0 %v3548_v0  ;;  %v1708_v62 = vshll.u32 %v3755_v28, 16  ;;  %v3223_v1 = vld [vmem:[%s3299_s16 + $0x10] sm:$0xff]   ;;  %s2255_s16 = sshll.u32 %s2251_s13, 4 }
  0x4b   : > { %2765 = vmatpush3.bf16.msra.mxu1 %v3183_v58  ;;  %v1289_v58 = vrot.slane %v3448_v42, 2  ;;  %v3636_v60 = vsel %vm1667_vm4, %v1689_v26, %v1693_v12  ;;  %v1907_v42 = vrot.slane %v3390_v63, 3  ;;  %v3668_v9 = vsel %vm1667_vm4, %v1693_v12, %v3652_v3  ;;  %v3212_v12 = vld [vmem:[%s3890_s1 + $0x1f0] sm:$0xff]   ;;  %p147_p3 = scmp.lt.s32.totalorder %s2255_s16, 95 }
  0x4c   : > { %2893 = vmatpush3.bf16.msra.mxu0 %v3184_v21  ;;  %2766 = vmatprep.subr.bf16.mxu1 %v3185_v36  ;;  %v3633_v21 = vsel %vm1273_vm3, %v1285_v22, %v3603_v37  ;;  %v653_v22 = vrot.slane %v3330_v27, 1  ;;  %v1483_v26 = vrot.slane %v3606_v39, 2 }
  0x4d   : > { %2894 = vmatprep.subr.bf16.mxu0 %v3186_v33  ;;  %v1290_v4 = vsel %vm1273_vm3, %v3603_v37, %v1289_v58  ;;  %v3678_v6 = vsel %vm1899_vm5, %v1907_v42, %v1909_v10  ;;  %v3214_v58 = vld [vmem:[%s3890_s1 + $0x1f8] sm:$0xff]   ;;  %s3894_s16 = smov (!%p147_p3, %s2255_s16), 95 }
  0x4e   : > { %2751 = vmatmul.mubr.bf16.gmra.mrb[4].mxu1 %v3330_v27  ;;  %s2256_s13 = sshll.u32 %s3894_s16, 2 }
  0x4f   : > { %2879 = vmatmul.mubr.bf16.gmra.mrb[4].mxu0 %v3566_v47  ;;  %2767 = vmatpush3.bf16.msra.mxu1 %v3185_v36  ;;  %v3194_v36 = vld [vmem:[%s3890_s1 + $0x1b0] sm:$0xff]   ;;  %s3864_s23 = scalar_lea.vmem %s3892_s3, %s2256_s13 }
  0x50   : > { %2895 = vmatpush3.bf16.msra.mxu0 %v3186_v33  ;;  %2768 = vmatprep.subr.bf16.mxu1 %v3187_v11  ;;  %v3655_v33 = vsel %vm647_vm2, %v857_v54, %v859_v50  ;;  %v3213_v54 = vld [vmem:[%s3890_s1 + $0xf8] sm:$0xff]   ;;  %v1901_v50 = vrot.slane %v3224_v2, 3 }
  0x51   : > { %2896 = vmatprep.subr.bf16.mxu0 %v3188_v56  ;;  %2754 = vmatprep.mubr.bf16.mxu1 %v3355_v43 }
  0x52   : > { %2882 = vmatprep.mubr.bf16.mxu0 %v3579_v19 }
  0x53   : > { %2769 = vmatpush3.bf16.msra.mxu1 %v3187_v11  ;;  %v1903_v11 = vrot.slane %v3355_v43, 3 }
  0x54   : > { %2897 = vmatpush3.bf16.msra.mxu0 %v3188_v56  ;;  %2770 = vmatprep.subr.bf16.mxu1 %v3189_v5  ;;  %v651_v56 = vrot.slane %v3314_v15, 1 }
  0x55   : > { %2898 = vmatprep.subr.bf16.mxu0 %v3190_v25 }
  0x56   : > { %2755 = vmatmul.mubr.bf16.gmra.mrb[8].mxu1 %v3367_v49  ;;  %v3689_v49 = vsel %vm1899_vm5, %v1903_v11, %v1905_v14  ;;  %v3708_v23 = vsel %vm647_vm2, %v649_v24, %v651_v56  ;;  %v3718_v27 = vsel %vm647_vm2, %v651_v56, %v653_v22  ;;  %v3202_v24 = vld [vmem:[%s3890_s1 + $0x1d0] sm:$0xff]  }
  0x57   : > { %2883 = vmatmul.mubr.bf16.gmra.mrb[8].mxu0 %v3597_v17  ;;  %2771 = vmatpush3.bf16.msra.mxu1 %v3189_v5  ;;  %v3701_v5 = vsel %vm1899_vm5, %v1905_v14, %v1907_v42 }
  0x58   : > { %2899 = vmatpush3.bf16.msra.mxu0 %v3190_v25  ;;  %2772 = vmatprep.subr.bf16.mxu1 %v3191_v34  ;;  %v3204_v25 = vld [vmem:[%s3890_s1 + $0x1d8] sm:$0xff]  }
  0x59   : > { %2900 = vmatprep.subr.bf16.mxu0 %v3192_v45  ;;  %2758 = vmatprep.mubr.bf16.mxu1 %v3390_v63  ;;  %v1913_v63 = vrot.slane %v3606_v39, 3 }
  0x5a   : > { %2886 = vmatprep.mubr.bf16.mxu0 %v3633_v21 }
  0x5b   : > { %2773 = vmatpush3.bf16.msra.mxu1 %v3191_v34  ;;  %v3694_v15 = vsel %vm1899_vm5, %v1911_v57, %v1913_v63  ;;  %v3210_v34 = vld [vmem:[%s3890_s1 + $0xf0] sm:$0xff]  }
  0x5c   : > { %2901 = vmatpush3.bf16.msra.mxu0 %v3192_v45  ;;  %2774 = vmatprep.subr.bf16.mxu1 %v3193_v20  ;;  %v1485_v45 = vrot.slane %v3755_v28, 2 }
  0x5d   : > { %2902 = vmatprep.subr.bf16.mxu0 %v3194_v36 }
  0x5e   : > { %2759 = vmatmul.mubr.bf16.gmra.mrb[12].mxu1 %v3406_v8  ;;  %v3197_v8 = vld [vmem:[%s3890_s1 + $0xc0] sm:$0xff]  }
  0x5f   : > { %2887 = vmatmul.mubr.bf16.gmra.mrb[12].mxu0 %v1290_v4  ;;  %2775 = vmatpush3.bf16.msra.mxu1 %v3193_v20  ;;  %v1710_v20 = vrot.slane %v1708_v62, 3 }
  0x60   : > { %2903 = vmatpush3.bf16.msra.mxu0 %v3194_v36  ;;  %2776 = vmatprep.subr.bf16.mxu1 %v3195_v48  ;;  %v1900_v36 = vrot.slane %v3223_v1, 3 }
  0x61   : > { %2904 = vmatprep.subr.bf16.mxu0 %v3196_v7  ;;  %2778 = vmatprep.mubr.bf16.mxu1 %v3497_v29  ;;  %v3199_v29 = vld [vmem:[%s3890_s1 + $0xc8] sm:$0xff]  }
  0x62   : > { %2906 = vmatprep.mubr.bf16.mxu0 %v3530_v55  ;;  %v3732_v55 = vsel %vm647_vm2, %v653_v22, %v655_v35  ;;  %v3205_v35 = vld [vmem:[%s3890_s1 + $0xe0] sm:$0xff]  }
  0x63   : > { %2777 = vmatpush3.bf16.msra.mxu1 %v3195_v48 }
  0x64   : > { %2905 = vmatpush3.bf16.msra.mxu0 %v3196_v7  ;;  %2794 = vmatprep.subr.bf16.mxu1 %v3197_v8 }
  0x65   : > { %2922 = vmatprep.subr.bf16.mxu0 %v3198_v31 }
  0x66   : > { %2779 = vmatmul.mubr.bf16.vlgmr.msra.gmra.mrb[0].mxu1 %v3708_v23 }
  0x67   : > { %2907 = vmatmul.mubr.bf16.vlgmr.msra.gmra.mrb[0].mxu0 %v3548_v0  ;;  %2795 = vmatpush3.bf16.msra.mxu1 %v3197_v8  ;;  %v3203_v0 = vld [vmem:[%s3890_s1 + $0xd8] sm:$0xff]  }
  0x68   : > { %2923 = vmatpush3.bf16.msra.mxu0 %v3198_v31  ;;  %2796 = vmatprep.subr.bf16.mxu1 %v3199_v29 }
  0x69   : > { %2924 = vmatprep.subr.bf16.mxu0 %v3200_v18  ;;  %2782 = vmatprep.mubr.bf16.mxu1 %v3718_v27 }
  0x6a   : > { %2910 = vmatprep.mubr.bf16.mxu0 %v3566_v47  ;;  %v3206_v47 = vld [vmem:[%s3890_s1 + $0x1e0] sm:$0xff]  }
  0x6b   : > { %2797 = vmatpush3.bf16.msra.mxu1 %v3199_v29 }
  0x6c   : > { %2925 = vmatpush3.bf16.msra.mxu0 %v3200_v18  ;;  %2798 = vmatprep.subr.bf16.mxu1 %v3201_v13 }
  0x6d   : > { %2926 = vmatprep.subr.bf16.mxu0 %v3202_v24 }
  0x6e   : > { %2783 = vmatmul.mubr.bf16.gmra.mrb[4].mxu1 %v3732_v55 }
  0x6f   : > { %2911 = vmatmul.mubr.bf16.gmra.mrb[4].mxu0 %v3579_v19  ;;  %2799 = vmatpush3.bf16.msra.mxu1 %v3201_v13  ;;  %v3207_v19 = vld [vmem:[%s3890_s1 + $0xe8] sm:$0xff]  }
  0x70   : > { %2927 = vmatpush3.bf16.msra.mxu0 %v3202_v24  ;;  %2800 = vmatprep.subr.bf16.mxu1 %v3203_v0 }
  0x71   : > { %2928 = vmatprep.subr.bf16.mxu0 %v3204_v25  ;;  %2786 = vmatprep.mubr.bf16.mxu1 %v3514_v46 }
  0x72   : > { %2914 = vmatprep.mubr.bf16.mxu0 %v3597_v17  ;;  %v1484_v17 = vsel %vm1273_vm3, %v3603_v37, %v1483_v26  ;;  %v1486_v37 = vsel %vm1273_vm3, %v1483_v26, %v1485_v45 }
  0x73   : > { %2801 = vmatpush3.bf16.msra.mxu1 %v3203_v0 }
  0x74   : > { %2929 = vmatpush3.bf16.msra.mxu0 %v3204_v25  ;;  %2802 = vmatprep.subr.bf16.mxu1 %v3205_v35 }
  0x75   : > { %2930 = vmatprep.subr.bf16.mxu0 %v3206_v47 }
  0x76   : > { %2787 = vmatmul.mubr.bf16.gmra.mrb[8].mxu1 %v3520_v51 }
  0x77   : > { %2915 = vmatmul.mubr.bf16.gmra.mrb[8].mxu0 %v3633_v21  ;;  %2803 = vmatpush3.bf16.msra.mxu1 %v3205_v35  ;;  %v3217_v21 = vld [vmem:[%s3890_s1 + $0x210] sm:$0xff]  }
  0x78   : > { %2931 = vmatpush3.bf16.msra.mxu0 %v3206_v47  ;;  %2804 = vmatprep.subr.bf16.mxu1 %v3207_v19 }
  0x79   : > { %2932 = vmatprep.subr.bf16.mxu0 %v3208_v30  ;;  %2790 = vmatprep.mubr.bf16.mxu1 %v3526_v53 }
  0x7a   : > { %2918 = vmatprep.mubr.bf16.mxu0 %v1484_v17 }
  0x7b   : > { %2805 = vmatpush3.bf16.msra.mxu1 %v3207_v19  ;;  %v3851_v19 = vld [vmem:[%s3891_s2] ss:$0 sm:$0xff] }
  0x7c   : > { %2933 = vmatpush3.bf16.msra.mxu0 %v3208_v30  ;;  %2806 = vmatprep.subr.bf16.mxu1 %v3210_v34 }
  0x7d   : > { %2934 = vmatprep.subr.bf16.mxu0 %v3212_v12 }
  0x7e   : > { %2791 = vmatmul.mubr.bf16.gmra.mrb[12].mxu1 %v3537_v38  ;;  %v3216_v38 = vld [vmem:[%s3890_s1 + $0x208] sm:$0xff]  }
  0x7f   : > { %2919 = vmatmul.mubr.bf16.gmra.mrb[12].mxu0 %v1486_v37  ;;  %2807 = vmatpush3.bf16.msra.mxu1 %v3210_v34 }
  0x80   : > { %2935 = vmatpush3.bf16.msra.mxu0 %v3212_v12  ;;  %2808 = vmatprep.subr.bf16.mxu1 %v3213_v54 }
  0x81   : > { %2936 = vmatprep.subr.bf16.mxu0 %v3214_v58  ;;  %2810 = vmatprep.mubr.bf16.mxu1 %v3708_v23 }
  0x82   : > { %2938 = vmatprep.mubr.bf16.mxu0 %v3609_v40  ;;  %v3218_v40 = vld [vmem:[%s3890_s1 + $0x218] sm:$0xff]  }
  0x83   : > { %2809 = vmatpush3.bf16.msra.mxu1 %v3213_v54 }
  0x84   : > { %2937 = vmatpush3.bf16.msra.mxu0 %v3214_v58  ;;  %2986 = vmatprep.subr.bf16.mxu1 %v3215_v59 }
  0x85   : > { %2954 = vmatprep.subr.bf16.mxu0 %v3215_v59 }
  0x86   : > { %2811 = vmatmul.mubr.bf16.vlgmr.msra.gmra.mrb[0].mxu1 %v3718_v27 }
  0x87   : > { %2939 = vmatmul.mubr.bf16.vlgmr.msra.gmra.mrb[0].mxu0 %v3612_v41  ;;  %2994 = vmatpush3.bf16.msra.mxu1 %v3215_v59  ;;  %v3219_v41 = vld [vmem:[%s3890_s1 + $0x220] sm:$0xff]  }
  0x88   : > { %2955 = vmatpush3.bf16.msra.mxu0 %v3215_v59  ;;  %2987 = vmatprep.subr.bf16.mxu1 %v3216_v38 }
  0x89   : > { %2956 = vmatprep.subr.bf16.mxu0 %v3216_v38  ;;  %2814 = vmatprep.mubr.bf16.mxu1 %v3732_v55 }
  0x8a   : > { %2942 = vmatprep.mubr.bf16.mxu0 %v3615_v44  ;;  %v1705_v44 = vshrl.u32 %v3755_v28, 16 }
  0x8b   : > { %2995 = vmatpush3.bf16.msra.mxu1 %v3216_v38 }
  0x8c   : > { %2957 = vmatpush3.bf16.msra.mxu0 %v3216_v38  ;;  %2988 = vmatprep.subr.bf16.mxu1 %v3217_v21 }
  0x8d   : > { %2958 = vmatprep.subr.bf16.mxu0 %v3217_v21 }
  0x8e   : > { %2815 = vmatmul.mubr.bf16.gmra.mrb[4].mxu1 %v3514_v46  ;;  %v3220_v46 = vld [vmem:[%s3890_s1 + $0x228] sm:$0xff]  }
  0x8f   : > { %2943 = vmatmul.mubr.bf16.gmra.mrb[4].mxu0 %v3621_v32  ;;  %2996 = vmatpush3.bf16.msra.mxu1 %v3217_v21  ;;  %v1707_v32 = vrot.slane %v1705_v44, 2 }
  0x90   : > { %2959 = vmatpush3.bf16.msra.mxu0 %v3217_v21  ;;  %2989 = vmatprep.subr.bf16.mxu1 %v3218_v40 }
  0x91   : > { %2960 = vmatprep.subr.bf16.mxu0 %v3218_v40  ;;  %2818 = vmatprep.mubr.bf16.mxu1 %v3520_v51  ;;  %v1711_v51 = vor.u32 %v1710_v20, %v1707_v32 }
  0x92   : > { %2946 = vmatprep.mubr.bf16.mxu0 %v3624_v52  ;;  %v3221_v52 = vld [vmem:[%s3890_s1 + $0x230] sm:$0xff]  }
  0x93   : > { %2997 = vmatpush3.bf16.msra.mxu1 %v3218_v40 }
  0x94   : > { %2961 = vmatpush3.bf16.msra.mxu0 %v3218_v40  ;;  %2990 = vmatprep.subr.bf16.mxu1 %v3219_v41 }
  0x95   : > { %2962 = vmatprep.subr.bf16.mxu0 %v3219_v41 }
  0x96   : > { %2819 = vmatmul.mubr.bf16.gmra.mrb[8].mxu1 %v3526_v53  ;;  %v1712_v53 = vsel %vm1667_vm4, %v3652_v3, %v1711_v51  ;;  %v1904_v3 = vsel %vm1899_vm5, %v1901_v50, %v1903_v11 }
  0x97   : > { %2947 = vmatmul.mubr.bf16.gmra.mrb[8].mxu0 %v3636_v60  ;;  %2998 = vmatpush3.bf16.msra.mxu1 %v3219_v41  ;;  %v3222_v60 = vld [vmem:[%s3890_s1 + $0x238] sm:$0xff]  }
  0x98   : > { %2963 = vmatpush3.bf16.msra.mxu0 %v3219_v41  ;;  %2991 = vmatprep.subr.bf16.mxu1 %v3220_v46 }
  0x99   : > { %2964 = vmatprep.subr.bf16.mxu0 %v3220_v46  ;;  %2822 = vmatprep.mubr.bf16.mxu1 %v3640_v61  ;;  %v1902_v61 = vsel %vm1899_vm5, %v1900_v36, %v1901_v50 }
  0x9a   : > { %2950 = vmatprep.mubr.bf16.mxu0 %v3668_v9 }
  0x9b   : > { %2999 = vmatpush3.bf16.msra.mxu1 %v3220_v46 }
  0x9c   : > { %2965 = vmatpush3.bf16.msra.mxu0 %v3220_v46  ;;  %2992 = vmatprep.subr.bf16.mxu1 %v3221_v52 }
  0x9d   : > { %2966 = vmatprep.subr.bf16.mxu0 %v3221_v52 }
  0x9e   : > { %2823 = vmatmul.mubr.bf16.gmra.mrb[12].mxu1 %v3655_v33  ;;  %v1915_v33 = vrot.slane %v3755_v28, 3 }
  0x9f   : > { %2951 = vmatmul.mubr.bf16.gmra.mrb[12].mxu0 %v1712_v53  ;;  %3000 = vmatpush3.bf16.msra.mxu1 %v3221_v52 }
  0xa0   : > { %2967 = vmatpush3.bf16.msra.mxu0 %v3221_v52  ;;  %2993 = vmatprep.subr.bf16.mxu1 %v3222_v60  ;;  %v1916_v4 = vsel %vm1899_vm5, %v1913_v63, %v1915_v33 }
  0xa1   : > { %2968 = vmatprep.subr.bf16.mxu0 %v3222_v60  ;;  %2970 = vmatprep.mubr.bf16.mxu0 %v1902_v61 }
  0xa2   : > { %2978 = vmatprep.mubr.bf16.mxu1 %v3678_v6 }
  0xa3   : > { %3001 = vmatpush3.bf16.msra.mxu1 %v3222_v60 }
  0xa4   : > { %2969 = vmatpush3.bf16.msra.mxu0 %v3222_v60 }
  0xa6   : > { %2979 = vmatmul.mubr.bf16.vlgmr.msra.gmra.mrb[16].mxu1 %v3684_v16 }
  0xa7   : > { %2971 = vmatmul.mubr.bf16.vlgmr.msra.gmra.mrb[0].mxu0 %v1904_v3  ;;  %2982 = vmatprep.mubr.bf16.mxu1 %v3694_v15 }
  0xa8   : > { %2974 = vmatprep.mubr.bf16.mxu0 %v3689_v49 }
  0xae   : > { %2983 = vmatmul.mubr.bf16.gmra.mrb[20].mxu1 %v1916_v4 }
  0xaf   : > { %2975 = vmatmul.mubr.bf16.gmra.mrb[4].mxu0 %v3701_v5 }
 0x159   : > { %v2812_v48 = vpop.f32.mrb[0].mxu1 }
 0x15a   : > { %v945_v43 = vpop.f32.mrb[1].mxu1 }
 0x15b   : > { %v2813_v42 = vpop.f32.mrb[2].mxu1 }
 0x15c   : > { %v948_v7 = vpop.f32.mrb[3].mxu1 }
 0x161   : > { %v3838_v9 = vpop.f32.mrb[4].mxu1 }
 0x162   : > { %v3840_v10 = vpop.f32.mrb[5].mxu1 }
 0x163   : > { %v3842_v11 = vpop.f32.mrb[6].mxu1 }
 0x164   : > { %v3844_v57 = vpop.f32.mrb[7].mxu1 }
 0x169   : > { %v2820_v14 = vpop.f32.mrb[8].mxu1 }
 0x16a   : > { %v2948_v56 = vpop.f32.mrb[8].mxu0  ;;  %v977_v39 = vpop.f32.mrb[9].mxu1 }
 0x16b   : > { %v3010_v63 = vadd.f32 %v2948_v56, %v2820_v14  ;;  %v1835_v6 = vpop.f32.mrb[9].mxu0  ;;  %v2821_v8 = vpop.f32.mrb[10].mxu1 }
 0x16c   : > { %v3012_v16 = vadd.f32 %v1835_v6, %v977_v39  ;;  %v2949_v49 = vpop.f32.mrb[10].mxu0  ;;  %v980_v15 = vpop.f32.mrb[11].mxu1 }
 0x16d   : > { %v3014_v31 = vadd.f32 %v2949_v49, %v2821_v8  ;;  %v1838_v5 = vpop.f32.mrb[11].mxu0 }
 0x16e   : > { %v3016_v22 = vadd.f32 %v1838_v5, %v980_v15 }
 0x171   : > { %v2824_v23 = vpop.f32.mrb[12].mxu1 }
 0x172   : > { %v2952_v29 = vpop.f32.mrb[12].mxu0  ;;  %v993_v18 = vpop.f32.mrb[13].mxu1 }
 0x173   : > { %v3018_v27 = vadd.f32 %v2952_v29, %v2824_v23  ;;  %v1851_v13 = vpop.f32.mrb[13].mxu0  ;;  %v2825_v24 = vpop.f32.mrb[14].mxu1 }
 0x174   : > { %v3020_v55 = vadd.f32 %v1851_v13, %v993_v18  ;;  %v2953_v0 = vpop.f32.mrb[14].mxu0  ;;  %v996_v25 = vpop.f32.mrb[15].mxu1 }
 0x175   : > { %v3022_v35 = vadd.f32 %v2953_v0, %v2825_v24  ;;  %v1854_v47 = vpop.f32.mrb[15].mxu0 }
 0x176   : > { %v3024_v26 = vadd.f32 %v1854_v47, %v996_v25 }
 0x179   : > { %v2980_v28 = vpop.f32.mrb[16].mxu1 }
 0x17a   : > { %v2972_v30 = vpop.f32.mrb[0].mxu0  ;;  %v3011_v17 = vadd.f32 %v3010_v63, %v2980_v28  ;;  %v2039_v34 = vpop.f32.mrb[17].mxu1 }
 0x17b   : > { %v3002_v45 = vadd.f32 %v2972_v30, %v2812_v48  ;;  %v2007_v12 = vpop.f32.mrb[1].mxu0  ;;  %v3013_v37 = vadd.f32 %v3012_v16, %v2039_v34  ;;  %v2981_v54 = vpop.f32.mrb[18].mxu1 }
 0x17c   : > { %v2103_v58 = vadd.f32 %v3011_v17, %v3851_v19  ;;  %v3003_v59 = vadd.f32 %v2007_v12, %v945_v43  ;;  %v2973_v38 = vpop.f32.mrb[2].mxu0  ;;  %v3015_v21 = vadd.f32 %v3014_v31, %v2981_v54  ;;  %v2042_v40 = vpop.f32.mrb[19].mxu1 }
 0x17d   : > { %v2095_v41 = vadd.f32 %v3002_v45, %v3851_v19  ;;  %v2101_v44 = vadd.f32 %v3013_v37, %v3851_v19  ;;  %v3004_v62 = vadd.f32 %v2973_v38, %v2813_v42  ;;  %v2010_v46 = vpop.f32.mrb[3].mxu0  ;;  %v3017_v32 = vadd.f32 %v3016_v22, %v2042_v40 }
 0x17e   : > { %v2093_v20 = vadd.f32 %v3003_v59, %v3851_v19  ;;  %v2104_v51 = vadd.f32 %v3015_v21, %v3851_v19  ;;  %v3005_v52 = vadd.f32 %v2010_v46, %v948_v7  ;;  %v2119_v2 = vmax.f32 %v2103_v58, 0.0 }
 0x17f   : > { %v2096_v1 = vadd.f32 %v3004_v62, %v3851_v19  ;;  %v2102_v36 = vadd.f32 %v3017_v32, %v3851_v19  ;;  %v2111_v60 = vmax.f32 %v2095_v41, 0.0  ;;  %v2117_v61 = vmax.f32 %v2101_v44, 0.0 }
 0x180   : > { %v2120_v50 = vmax.f32 %v2104_v51, 0.0  ;;  %v2094_v53 = vadd.f32 %v3005_v52, %v3851_v19  ;;  %v2109_v48 = vmax.f32 %v2093_v20, 0.0 }
 0x181   : > { %v2112_v3 = vmax.f32 %v2096_v1, 0.0  ;;  %v2118_v33 = vmax.f32 %v2102_v36, 0.0  ;;  %v2984_v4 = vpop.f32.mrb[20].mxu1 }
 0x182   : > { %v2535_v43 = vpack.c.bf16 %v2120_v50, %v2119_v2  ;;  %v2110_v42 = vmax.f32 %v2094_v53, 0.0  ;;  %v2976_v7 = vpop.f32.mrb[4].mxu0  ;;  %v3019_v14 = vadd.f32 %v3018_v27, %v2984_v4  ;;  %v2055_v56 = vpop.f32.mrb[21].mxu1 }
 0x183   : > { %v2515_v39 = vpack.c.bf16 %v2112_v3, %v2111_v60  ;;  %v2530_v63 = vpack.c.bf16 %v2118_v33, %v2117_v61  ;;  %v3006_v6 = vadd.f32 %v2976_v7, %v3838_v9  ;;  %v2023_v8 = vpop.f32.mrb[5].mxu0  ;;  %v3021_v16 = vadd.f32 %v3020_v55, %v2055_v56  ;;  %v2985_v49 = vpop.f32.mrb[22].mxu1 }
 0x184   : > { %2551 = vst [vmem:[%s3864_s23 + $0x28] sm:$0xff] %v2535_v43   ;;  %v2510_v15 = vpack.c.bf16 %v2110_v42, %v2109_v48  ;;  %v2107_v31 = vadd.f32 %v3019_v14, %v3851_v19  ;;  %v3007_v5 = vadd.f32 %v2023_v8, %v3840_v10  ;;  %v2977_v22 = vpop.f32.mrb[6].mxu0  ;;  %v3023_v23 = vadd.f32 %v3022_v35, %v2985_v49  ;;  %v2058_v29 = vpop.f32.mrb[23].mxu1 }
 0x185   : > { %2547 = vst [vmem:[%s3864_s23 + $0x8] sm:$0xff] %v2515_v39   ;;  %2550 = vst [vmem:[%s3864_s23 + $0x20] sm:$0xff] %v2530_v63   ;;  %v2099_v18 = vadd.f32 %v3006_v6, %v3851_v19  ;;  %v2105_v27 = vadd.f32 %v3021_v16, %v3851_v19  ;;  %v3008_v9 = vadd.f32 %v2977_v22, %v3842_v11  ;;  %v2026_v13 = vpop.f32.mrb[7].mxu0 }
 0x186   : > { %v3025_v24 = vadd.f32 %v3024_v26, %v2058_v29  ;;  %2511 = vst [vmem:[%s3864_s23] sm:$0xff] %v2510_v15   ;;  %v2097_v55 = vadd.f32 %v3007_v5, %v3851_v19  ;;  %v2108_v0 = vadd.f32 %v3023_v23, %v3851_v19  ;;  %v3009_v10 = vadd.f32 %v2026_v13, %v3844_v57 }
 0x187   : > { %v2100_v25 = vadd.f32 %v3008_v9, %v3851_v19  ;;  %v2123_v47 = vmax.f32 %v2107_v31, 0.0  ;;  %v2115_v26 = vmax.f32 %v2099_v18, 0.0  ;;  %v2121_v30 = vmax.f32 %v2105_v27, 0.0 }
 0x188   : > { %v2106_v35 = vadd.f32 %v3025_v24, %v3851_v19  ;;  %v2124_v28 = vmax.f32 %v2108_v0, 0.0  ;;  %v2098_v11 = vadd.f32 %v3009_v10, %v3851_v19  ;;  %v2113_v45 = vmax.f32 %v2097_v55, 0.0 }
 0x189   : > { %v2116_v17 = vmax.f32 %v2100_v25, 0.0 }
 0x18a   : > { %v2122_v34 = vmax.f32 %v2106_v35, 0.0  ;;  %v2545_v12 = vpack.c.bf16 %v2124_v28, %v2123_v47  ;;  %v2114_v37 = vmax.f32 %v2098_v11, 0.0 }
 0x18b   : > { %v2525_v54 = vpack.c.bf16 %v2116_v17, %v2115_v26 }
 0x18c   : > { %v2540_v57 = vpack.c.bf16 %v2122_v34, %v2121_v30  ;;  %2553 = vst [vmem:[%s3864_s23 + $0x38] sm:$0xff] %v2545_v12   ;;  %v2520_v58 = vpack.c.bf16 %v2114_v37, %v2113_v45 }
 0x18d   : > { %2549 = vst [vmem:[%s3864_s23 + $0x18] sm:$0xff] %v2525_v54  }
 0x18e   : > { %2552 = vst [vmem:[%s3864_s23 + $0x30] sm:$0xff] %v2540_v57   ;;  %2548 = vst [vmem:[%s3864_s23 + $0x10] sm:$0xff] %v2520_v58  }
 0x18f PF: > { %s13_s12 = sadd.s32 1, %s3231_s12  }
 0x190   : > { %p10_p4 = scmp.ge.s32.totalorder %s13_s12, 8  }
 0x192   :  { %12 = sbr.rel (!%p10_p4) target bundleno = 1 (0x1), region = 68 }

</bundles_post_ra>
